<compile_context>
chip_gen: v5e
topology: v5e:2x2
jax: 0.10.0
libtpu: 0.0.40
codegen_flags: <defaults>
</compile_context>

<pallas_src>
import jax
import jax.numpy as jnp
from jax.experimental import pallas as pl
from jax.experimental.pallas import tpu as pltpu

VOC_SIZE = 27
EMB_SIZE = 10
N_LAYERS = 1
HIDDEN = 128
VOC_PAD = 128          # lane-dense padded vocab for the output projection
TBL_PAD = 32           # sublane-padded vocab rows for the one-hot gate gather

assert N_LAYERS == 1, "kernel implements a single LSTM layer"


def char_rnn_kernel(ids_ref, gate_tbl_ref, h0_ref, c0_ref, whh_ref,
                    wlin_ref, blin_ref,
                    out_ref, hN_ref, cN_ref,
                    gx_scratch, h_scratch):
    """Single-invocation kernel (no grid): whole sequence resident on-chip.

    ids_ref      : (N, 1)        int32, VMEM -- token ids
    gate_tbl_ref : (TBL_PAD, 4H) f32,   VMEM -- emb @ W_ih.T + (b_ih + b_hh),
                                               gate cols permuted to [i|f|o|g]
    h0/c0        : (1, H)        f32,   VMEM
    whh_ref      : (H, 4H)       bf16,  VMEM -- W_hh.T, cols [i|f|o|g]
    wlin_ref     : (H, Vp)       f32,   VMEM -- W_lin.T, zero-padded to 128
    blin_ref     : (1, Vp)       f32,   VMEM
    out_ref      : (N, Vp)       f32
    hN/cN        : (1, H)        f32          (aliased onto h0/c0)
    gx_scratch   : (N, 4H)       f32 VMEM scratch -- per-step input gates
    h_scratch    : (N, H)        f32 VMEM scratch -- per-step hidden states
    """
    n_steps = out_ref.shape[0]
    H = h0_ref.shape[1]

    # ---- Embedding + input projection for every timestep, off the serial
    # chain: one-hot (N, TBL_PAD) @ gate_tbl (TBL_PAD, 4H) on the MXU.
    ids = ids_ref[...]                                              # (N, 1)
    iota = jax.lax.broadcasted_iota(jnp.int32, (n_steps, TBL_PAD), 1)
    onehot = (iota == ids).astype(jnp.float32)                      # (N, 32)
    gx_scratch[...] = jnp.dot(onehot, gate_tbl_ref[...],
                              preferred_element_type=jnp.float32)   # (N, 4H)

    h = h0_ref[...]                 # (1, H) carried in vregs
    c = c0_ref[...]                 # (1, H)

    for t in range(n_steps):        # fully unrolled: N is a compile-time const
        gx = gx_scratch[pl.ds(t, 1), :]                             # (1, 4H)
        # bf16 operands -> single-pass MXU; accumulate in f32; W_hh streamed
        # from VMEM (not hoisted into the register file).
        gates = gx + jnp.dot(h.astype(jnp.bfloat16), whh_ref[...],
                             preferred_element_type=jnp.float32)
        # Gate layout prepacked as [ i | f | o | g ]: sigmoid only over 3H.
        sig = jax.nn.sigmoid(gates[:, :3 * H])
        i_g = sig[:, 0 * H:1 * H]
        f_g = sig[:, 1 * H:2 * H]
        o_g = sig[:, 2 * H:3 * H]
        g_g = jnp.tanh(gates[:, 3 * H:4 * H])
        c = f_g * c + i_g * g_g
        h = o_g * jnp.tanh(c)
        h_scratch[pl.ds(t, 1), :] = h           # vst slot is idle: free store

    hN_ref[...] = h
    cN_ref[...] = c

    # Output projection for all timesteps: (N, H) @ (H, Vp) + b, lane-dense.
    out_ref[...] = (
        jnp.dot(h_scratch[...], wlin_ref[...],
                preferred_element_type=jnp.float32)
        + blin_ref[...]
    )


def prepare_params(params):
    """One-time (cacheable) repack of module params into kernel layouts."""
    emb_table, w_ih, w_hh, b_ih, b_hh, w_lin, b_lin = params
    H, V = HIDDEN, VOC_SIZE
    # Column permutation: PyTorch gate order [i|f|g|o] -> kernel order [i|f|o|g].
    perm = jnp.concatenate([jnp.arange(0, 2 * H),
                            jnp.arange(3 * H, 4 * H),
                            jnp.arange(2 * H, 3 * H)])
    # Fused embedding + input projection + biases: (V, 4H), then row-pad to 32.
    gate_tbl = (emb_table @ w_ih.T + (b_ih + b_hh)[None, :]).astype(jnp.float32)
    gate_tbl = gate_tbl[:, perm]
    gate_tbl_p = jnp.zeros((TBL_PAD, 4 * H), jnp.float32).at[:V, :].set(gate_tbl)
    # Recurrence weights: transposed, gate-permuted, bf16 (MXU operand dtype).
    whh_t = w_hh.T[:, perm].astype(jnp.bfloat16)                    # (H, 4H)
    # Lane-dense (padded-to-128) output projection, kept f32.
    wlin_p = jnp.zeros((H, VOC_PAD), jnp.float32).at[:, :V].set(w_lin.T)
    blin_p = jnp.zeros((1, VOC_PAD), jnp.float32).at[:, :V].set(b_lin[None, :])
    return (gate_tbl_p, whh_t, wlin_p, blin_p)


@jax.jit
def char_rnn_forward(inp, hidden, kparams):
    """Mirrors CharRNN.forward(inp, hidden) -> (logits, (hN, cN))."""
    gate_tbl_p, whh_t, wlin_p, blin_p = kparams
    H, V = HIDDEN, VOC_SIZE

    ids = inp.reshape(-1, 1).astype(jnp.int32)     # inp.view(1, -1) flattened
    N = ids.shape[0]

    h0 = hidden[0].reshape(1, H)
    c0 = hidden[1].reshape(1, H)

    vmem = pl.BlockSpec(memory_space=pltpu.MemorySpace.VMEM)

    out_p, h_n, c_n = pl.pallas_call(
        char_rnn_kernel,
        out_shape=(
            jax.ShapeDtypeStruct((N, VOC_PAD), jnp.float32),
            jax.ShapeDtypeStruct((1, H), jnp.float32),
            jax.ShapeDtypeStruct((1, H), jnp.float32),
        ),
        in_specs=[vmem] * 7,
        out_specs=(vmem, vmem, vmem),
        scratch_shapes=[
            pltpu.VMEM((N, 4 * H), jnp.float32),   # per-step input-gate rows
            pltpu.VMEM((N, H), jnp.float32),       # per-step hidden states
        ],
        input_output_aliases={2: 1, 3: 2},         # h0 -> hN, c0 -> cN
    )(ids, gate_tbl_p, h0, c0, whh_t, wlin_p, blin_p)

    out = out_p[:, :V]                             # strip lane padding
    return out, (h_n.reshape(N_LAYERS, 1, H), c_n.reshape(N_LAYERS, 1, H))


def reference_forward(inp, hidden, params):
    """Pure-JAX f32 reference matching PyTorch LSTM semantics (order i,f,g,o)."""
    emb_table, w_ih, w_hh, b_ih, b_hh, w_lin, b_lin = params
    H = HIDDEN
    x = jnp.take(emb_table, inp.reshape(-1).astype(jnp.int32), axis=0)
    h = hidden[0].reshape(1, H)
    c = hidden[1].reshape(1, H)
    hs = []
    for t in range(x.shape[0]):
        gates = x[t:t + 1] @ w_ih.T + b_ih + h @ w_hh.T + b_hh
        i_g = jax.nn.sigmoid(gates[:, 0 * H:1 * H])
        f_g = jax.nn.sigmoid(gates[:, 1 * H:2 * H])
        g_g = jnp.tanh(gates[:, 2 * H:3 * H])
        o_g = jax.nn.sigmoid(gates[:, 3 * H:4 * H])
        c = f_g * c + i_g * g_g
        h = o_g * jnp.tanh(c)
        hs.append(h)
    h_all = jnp.concatenate(hs, axis=0)
    out = h_all @ w_lin.T + b_lin
    return out, (h.reshape(1, 1, H), c.reshape(1, 1, H))


def init_params(key):
    """Deterministic synthetic params with PyTorch-default-style init."""
    k_emb, k_wih, k_whh, k_bih, k_bhh, k_wl, k_bl = jax.random.split(key, 7)
    H, E, V = HIDDEN, EMB_SIZE, VOC_SIZE
    s_lstm = 1.0 / jnp.sqrt(H)
    s_lin = 1.0 / jnp.sqrt(H)
    emb_table = jax.random.normal(k_emb, (V, E), jnp.float32)
    w_ih = jax.random.uniform(k_wih, (4 * H, E), jnp.float32, -s_lstm, s_lstm)
    w_hh = jax.random.uniform(k_whh, (4 * H, H), jnp.float32, -s_lstm, s_lstm)
    b_ih = jax.random.uniform(k_bih, (4 * H,), jnp.float32, -s_lstm, s_lstm)
    b_hh = jax.random.uniform(k_bhh, (4 * H,), jnp.float32, -s_lstm, s_lstm)
    w_lin = jax.random.uniform(k_wl, (V, H), jnp.float32, -s_lin, s_lin)
    b_lin = jax.random.uniform(k_bl, (V,), jnp.float32, -s_lin, s_lin)
    return (emb_table, w_ih, w_hh, b_ih, b_hh, w_lin, b_lin)


if __name__ == "__main__":
    key = jax.random.PRNGKey(0)
    k_params, k_inp = jax.random.split(key)
    params = init_params(k_params)
    kparams = prepare_params(params)    # computed once, reused across calls

    SEQ = 8  # small sequence length
    inp = jax.random.randint(k_inp, (SEQ,), 0, VOC_SIZE, jnp.int32)
    # init_hidden(): zeros (n_layers, 1, hidden)
    hidden = (jnp.zeros((N_LAYERS, 1, HIDDEN), jnp.float32),
              jnp.zeros((N_LAYERS, 1, HIDDEN), jnp.float32))

    out, (h_n, c_n) = char_rnn_forward(inp, hidden, kparams)
    out = jax.block_until_ready(out)
    h_n = jax.block_until_ready(h_n)
    c_n = jax.block_until_ready(c_n)

    # Sanity check against a pure-JAX f32 reference.  Tolerance is loosened vs
    # the all-f32 kernel because the recurrence matmul now uses bf16 operands.
    ref_out, (ref_h, ref_c) = reference_forward(inp, hidden, params)
    assert out.shape == (SEQ, VOC_SIZE)
    assert h_n.shape == (N_LAYERS, 1, HIDDEN) and c_n.shape == (N_LAYERS, 1, HIDDEN)
    assert jnp.allclose(out, ref_out, atol=3e-2, rtol=3e-2)
    assert jnp.allclose(h_n, ref_h, atol=3e-2, rtol=3e-2)
    assert jnp.allclose(c_n, ref_c, atol=3e-2, rtol=3e-2)

    print("KERNEL_OK")
</pallas_src>

<mosaic_0001>
module attributes {stable_mosaic.version = 11 : i64} {
  func.func @char_rnn_kernel(%arg0: memref<8x1xi32, #tpu.memory_space<vmem>>, %arg1: memref<32x512xf32, #tpu.memory_space<vmem>>, %arg2: memref<1x128xf32, #tpu.memory_space<vmem>>, %arg3: memref<1x128xf32, #tpu.memory_space<vmem>>, %arg4: memref<128x512xbf16, #tpu.memory_space<vmem>>, %arg5: memref<128x128xf32, #tpu.memory_space<vmem>>, %arg6: memref<1x128xf32, #tpu.memory_space<vmem>>, %arg7: memref<8x128xf32, #tpu.memory_space<vmem>>, %arg8: memref<1x128xf32, #tpu.memory_space<vmem>>, %arg9: memref<1x128xf32, #tpu.memory_space<vmem>>, %arg10: memref<8x512xf32, #tpu.memory_space<vmem>>, %arg11: memref<8x128xf32, #tpu.memory_space<vmem>>) attributes {dimension_semantics = [], scalar_prefetch = 0 : i64, scratch_operands = 2 : i64, tpu.core_type = #tpu.core_type<tc>} {
    %c0 = arith.constant 0 : index
    %c0_0 = arith.constant 0 : index
    %0 = vector.load %arg0[%c0, %c0_0] : memref<8x1xi32, #tpu.memory_space<vmem>>, vector<8x1xi32>
    %1 = tpu.iota {dimensions = array<i32: 1>} : vector<8x32xi32>
    %2 = vector.broadcast %0 : vector<8x1xi32> to vector<8x32xi32>
    %3 = arith.cmpi eq, %1, %2 : vector<8x32xi32>
    %4 = arith.extui %3 : vector<8x32xi1> to vector<8x32xi32>
    %5 = arith.sitofp %4 : vector<8x32xi32> to vector<8x32xf32>
    %c0_1 = arith.constant 0 : index
    %c0_2 = arith.constant 0 : index
    %6 = vector.load %arg1[%c0_1, %c0_2] : memref<32x512xf32, #tpu.memory_space<vmem>>, vector<32x512xf32>
    %cst = arith.constant dense<0.000000e+00> : vector<8x512xf32>
    %7 = tpu.matmul %5, %6, %cst {dimension_numbers = #tpu.dot_dimension_numbers<[1], [0], [0], [1], [0, 0, 1, 1], [], []>} : vector<8x32xf32>, vector<32x512xf32>, vector<8x512xf32> -> vector<8x512xf32>
    %c0_3 = arith.constant 0 : index
    %c0_4 = arith.constant 0 : index
    %8 = vector.load %arg10[%c0_3, %c0_4] : memref<8x512xf32, #tpu.memory_space<vmem>>, vector<8x512xf32>
    tpu.vector_store %arg10[%c0_3, %c0_4], %7 {strides = array<i32>} : memref<8x512xf32, #tpu.memory_space<vmem>>, vector<8x512xf32>,
    %c0_5 = arith.constant 0 : index
    %c0_6 = arith.constant 0 : index
    %9 = vector.load %arg2[%c0_5, %c0_6] : memref<1x128xf32, #tpu.memory_space<vmem>>, vector<1x128xf32>
    %c0_7 = arith.constant 0 : index
    %c0_8 = arith.constant 0 : index
    %10 = vector.load %arg3[%c0_7, %c0_8] : memref<1x128xf32, #tpu.memory_space<vmem>>, vector<1x128xf32>
    %c0_9 = arith.constant 0 : index
    %c0_10 = arith.constant 0 : index
    %11 = vector.load %arg10[%c0_9, %c0_10] : memref<8x512xf32, #tpu.memory_space<vmem>>, vector<1x512xf32>
    %12 = arith.truncf %9 : vector<1x128xf32> to vector<1x128xbf16>
    %c0_11 = arith.constant 0 : index
    %c0_12 = arith.constant 0 : index
    %13 = vector.load %arg4[%c0_11, %c0_12] : memref<128x512xbf16, #tpu.memory_space<vmem>>, vector<128x512xbf16>
    %cst_13 = arith.constant dense<0.000000e+00> : vector<1x512xf32>
    %14 = tpu.matmul %12, %13, %cst_13 {dimension_numbers = #tpu.dot_dimension_numbers<[1], [0], [0], [1], [0, 0, 1, 1], [], []>} : vector<1x128xbf16>, vector<128x512xbf16>, vector<1x512xf32> -> vector<1x512xf32>
    %15 = arith.addf %11, %14 : vector<1x512xf32>
    %16 = vector.extract_strided_slice %15 {offsets = [0, 0], sizes = [1, 384], strides = [1, 1]} : vector<1x512xf32> to vector<1x384xf32>
    %17 = arith.negf %16 : vector<1x384xf32>
    %18 = math.exp %17 : vector<1x384xf32>
    %cst_14 = arith.constant 1.000000e+00 : f32
    %19 = vector.broadcast %cst_14 : f32 to vector<1x384xf32>
    %20 = arith.addf %19, %18 : vector<1x384xf32>
    %21 = arith.divf %19, %20 : vector<1x384xf32>
    %22 = vector.extract_strided_slice %21 {offsets = [0, 0], sizes = [1, 128], strides = [1, 1]} : vector<1x384xf32> to vector<1x128xf32>
    %23 = vector.extract_strided_slice %21 {offsets = [0, 128], sizes = [1, 128], strides = [1, 1]} : vector<1x384xf32> to vector<1x128xf32>
    %24 = vector.extract_strided_slice %21 {offsets = [0, 256], sizes = [1, 128], strides = [1, 1]} : vector<1x384xf32> to vector<1x128xf32>
    %25 = vector.extract_strided_slice %15 {offsets = [0, 384], sizes = [1, 128], strides = [1, 1]} : vector<1x512xf32> to vector<1x128xf32>
    %26 = math.tanh %25 : vector<1x128xf32>
    %27 = arith.mulf %23, %10 : vector<1x128xf32>
    %28 = arith.mulf %22, %26 : vector<1x128xf32>
    %29 = arith.addf %27, %28 : vector<1x128xf32>
    %30 = math.tanh %29 : vector<1x128xf32>
    %31 = arith.mulf %24, %30 : vector<1x128xf32>
    %c0_15 = arith.constant 0 : index
    %c0_16 = arith.constant 0 : index
    %32 = vector.load %arg11[%c0_15, %c0_16] : memref<8x128xf32, #tpu.memory_space<vmem>>, vector<1x128xf32>
    tpu.vector_store %arg11[%c0_15, %c0_16], %31 {strides = array<i32>} : memref<8x128xf32, #tpu.memory_space<vmem>>, vector<1x128xf32>,
    %c1 = arith.constant 1 : index
    %c0_17 = arith.constant 0 : index
    %33 = vector.load %arg10[%c1, %c0_17] : memref<8x512xf32, #tpu.memory_space<vmem>>, vector<1x512xf32>
    %34 = arith.truncf %31 : vector<1x128xf32> to vector<1x128xbf16>
    %c0_18 = arith.constant 0 : index
    %c0_19 = arith.constant 0 : index
    %35 = vector.load %arg4[%c0_18, %c0_19] : memref<128x512xbf16, #tpu.memory_space<vmem>>, vector<128x512xbf16>
    %cst_20 = arith.constant dense<0.000000e+00> : vector<1x512xf32>
    %36 = tpu.matmul %34, %35, %cst_20 {dimension_numbers = #tpu.dot_dimension_numbers<[1], [0], [0], [1], [0, 0, 1, 1], [], []>} : vector<1x128xbf16>, vector<128x512xbf16>, vector<1x512xf32> -> vector<1x512xf32>
    %37 = arith.addf %33, %36 : vector<1x512xf32>
    %38 = vector.extract_strided_slice %37 {offsets = [0, 0], sizes = [1, 384], strides = [1, 1]} : vector<1x512xf32> to vector<1x384xf32>
    %39 = arith.negf %38 : vector<1x384xf32>
    %40 = math.exp %39 : vector<1x384xf32>
    %cst_21 = arith.constant 1.000000e+00 : f32
    %41 = vector.broadcast %cst_21 : f32 to vector<1x384xf32>
    %42 = arith.addf %41, %40 : vector<1x384xf32>
    %43 = arith.divf %41, %42 : vector<1x384xf32>
    %44 = vector.extract_strided_slice %43 {offsets = [0, 0], sizes = [1, 128], strides = [1, 1]} : vector<1x384xf32> to vector<1x128xf32>
    %45 = vector.extract_strided_slice %43 {offsets = [0, 128], sizes = [1, 128], strides = [1, 1]} : vector<1x384xf32> to vector<1x128xf32>
    %46 = vector.extract_strided_slice %43 {offsets = [0, 256], sizes = [1, 128], strides = [1, 1]} : vector<1x384xf32> to vector<1x128xf32>
    %47 = vector.extract_strided_slice %37 {offsets = [0, 384], sizes = [1, 128], strides = [1, 1]} : vector<1x512xf32> to vector<1x128xf32>
    %48 = math.tanh %47 : vector<1x128xf32>
    %49 = arith.mulf %45, %29 : vector<1x128xf32>
    %50 = arith.mulf %44, %48 : vector<1x128xf32>
    %51 = arith.addf %49, %50 : vector<1x128xf32>
    %52 = math.tanh %51 : vector<1x128xf32>
    %53 = arith.mulf %46, %52 : vector<1x128xf32>
    %c1_22 = arith.constant 1 : index
    %c0_23 = arith.constant 0 : index
    %54 = vector.load %arg11[%c1_22, %c0_23] : memref<8x128xf32, #tpu.memory_space<vmem>>, vector<1x128xf32>
    tpu.vector_store %arg11[%c1_22, %c0_23], %53 {strides = array<i32>} : memref<8x128xf32, #tpu.memory_space<vmem>>, vector<1x128xf32>,
    %c2 = arith.constant 2 : index
    %c0_24 = arith.constant 0 : index
    %55 = vector.load %arg10[%c2, %c0_24] : memref<8x512xf32, #tpu.memory_space<vmem>>, vector<1x512xf32>
    %56 = arith.truncf %53 : vector<1x128xf32> to vector<1x128xbf16>
    %c0_25 = arith.constant 0 : index
    %c0_26 = arith.constant 0 : index
    %57 = vector.load %arg4[%c0_25, %c0_26] : memref<128x512xbf16, #tpu.memory_space<vmem>>, vector<128x512xbf16>
    %cst_27 = arith.constant dense<0.000000e+00> : vector<1x512xf32>
    %58 = tpu.matmul %56, %57, %cst_27 {dimension_numbers = #tpu.dot_dimension_numbers<[1], [0], [0], [1], [0, 0, 1, 1], [], []>} : vector<1x128xbf16>, vector<128x512xbf16>, vector<1x512xf32> -> vector<1x512xf32>
    %59 = arith.addf %55, %58 : vector<1x512xf32>
    %60 = vector.extract_strided_slice %59 {offsets = [0, 0], sizes = [1, 384], strides = [1, 1]} : vector<1x512xf32> to vector<1x384xf32>
    %61 = arith.negf %60 : vector<1x384xf32>
    %62 = math.exp %61 : vector<1x384xf32>
    %cst_28 = arith.constant 1.000000e+00 : f32
    %63 = vector.broadcast %cst_28 : f32 to vector<1x384xf32>
    %64 = arith.addf %63, %62 : vector<1x384xf32>
    %65 = arith.divf %63, %64 : vector<1x384xf32>
    %66 = vector.extract_strided_slice %65 {offsets = [0, 0], sizes = [1, 128], strides = [1, 1]} : vector<1x384xf32> to vector<1x128xf32>
    %67 = vector.extract_strided_slice %65 {offsets = [0, 128], sizes = [1, 128], strides = [1, 1]} : vector<1x384xf32> to vector<1x128xf32>
    %68 = vector.extract_strided_slice %65 {offsets = [0, 256], sizes = [1, 128], strides = [1, 1]} : vector<1x384xf32> to vector<1x128xf32>
    %69 = vector.extract_strided_slice %59 {offsets = [0, 384], sizes = [1, 128], strides = [1, 1]} : vector<1x512xf32> to vector<1x128xf32>
    %70 = math.tanh %69 : vector<1x128xf32>
    %71 = arith.mulf %67, %51 : vector<1x128xf32>
    %72 = arith.mulf %66, %70 : vector<1x128xf32>
    %73 = arith.addf %71, %72 : vector<1x128xf32>
    %74 = math.tanh %73 : vector<1x128xf32>
    %75 = arith.mulf %68, %74 : vector<1x128xf32>
    %c2_29 = arith.constant 2 : index
    %c0_30 = arith.constant 0 : index
    %76 = vector.load %arg11[%c2_29, %c0_30] : memref<8x128xf32, #tpu.memory_space<vmem>>, vector<1x128xf32>
    tpu.vector_store %arg11[%c2_29, %c0_30], %75 {strides = array<i32>} : memref<8x128xf32, #tpu.memory_space<vmem>>, vector<1x128xf32>,
    %c3 = arith.constant 3 : index
    %c0_31 = arith.constant 0 : index
    %77 = vector.load %arg10[%c3, %c0_31] : memref<8x512xf32, #tpu.memory_space<vmem>>, vector<1x512xf32>
    %78 = arith.truncf %75 : vector<1x128xf32> to vector<1x128xbf16>
    %c0_32 = arith.constant 0 : index
    %c0_33 = arith.constant 0 : index
    %79 = vector.load %arg4[%c0_32, %c0_33] : memref<128x512xbf16, #tpu.memory_space<vmem>>, vector<128x512xbf16>
    %cst_34 = arith.constant dense<0.000000e+00> : vector<1x512xf32>
    %80 = tpu.matmul %78, %79, %cst_34 {dimension_numbers = #tpu.dot_dimension_numbers<[1], [0], [0], [1], [0, 0, 1, 1], [], []>} : vector<1x128xbf16>, vector<128x512xbf16>, vector<1x512xf32> -> vector<1x512xf32>
    %81 = arith.addf %77, %80 : vector<1x512xf32>
    %82 = vector.extract_strided_slice %81 {offsets = [0, 0], sizes = [1, 384], strides = [1, 1]} : vector<1x512xf32> to vector<1x384xf32>
    %83 = arith.negf %82 : vector<1x384xf32>
    %84 = math.exp %83 : vector<1x384xf32>
    %cst_35 = arith.constant 1.000000e+00 : f32
    %85 = vector.broadcast %cst_35 : f32 to vector<1x384xf32>
    %86 = arith.addf %85, %84 : vector<1x384xf32>
    %87 = arith.divf %85, %86 : vector<1x384xf32>
    %88 = vector.extract_strided_slice %87 {offsets = [0, 0], sizes = [1, 128], strides = [1, 1]} : vector<1x384xf32> to vector<1x128xf32>
    %89 = vector.extract_strided_slice %87 {offsets = [0, 128], sizes = [1, 128], strides = [1, 1]} : vector<1x384xf32> to vector<1x128xf32>
    %90 = vector.extract_strided_slice %87 {offsets = [0, 256], sizes = [1, 128], strides = [1, 1]} : vector<1x384xf32> to vector<1x128xf32>
    %91 = vector.extract_strided_slice %81 {offsets = [0, 384], sizes = [1, 128], strides = [1, 1]} : vector<1x512xf32> to vector<1x128xf32>
    %92 = math.tanh %91 : vector<1x128xf32>
    %93 = arith.mulf %89, %73 : vector<1x128xf32>
    %94 = arith.mulf %88, %92 : vector<1x128xf32>
    %95 = arith.addf %93, %94 : vector<1x128xf32>
    %96 = math.tanh %95 : vector<1x128xf32>
    %97 = arith.mulf %90, %96 : vector<1x128xf32>
    %c3_36 = arith.constant 3 : index
    %c0_37 = arith.constant 0 : index
    %98 = vector.load %arg11[%c3_36, %c0_37] : memref<8x128xf32, #tpu.memory_space<vmem>>, vector<1x128xf32>
    tpu.vector_store %arg11[%c3_36, %c0_37], %97 {strides = array<i32>} : memref<8x128xf32, #tpu.memory_space<vmem>>, vector<1x128xf32>,
    %c4 = arith.constant 4 : index
    %c0_38 = arith.constant 0 : index
    %99 = vector.load %arg10[%c4, %c0_38] : memref<8x512xf32, #tpu.memory_space<vmem>>, vector<1x512xf32>
    %100 = arith.truncf %97 : vector<1x128xf32> to vector<1x128xbf16>
    %c0_39 = arith.constant 0 : index
    %c0_40 = arith.constant 0 : index
    %101 = vector.load %arg4[%c0_39, %c0_40] : memref<128x512xbf16, #tpu.memory_space<vmem>>, vector<128x512xbf16>
    %cst_41 = arith.constant dense<0.000000e+00> : vector<1x512xf32>
    %102 = tpu.matmul %100, %101, %cst_41 {dimension_numbers = #tpu.dot_dimension_numbers<[1], [0], [0], [1], [0, 0, 1, 1], [], []>} : vector<1x128xbf16>, vector<128x512xbf16>, vector<1x512xf32> -> vector<1x512xf32>
    %103 = arith.addf %99, %102 : vector<1x512xf32>
    %104 = vector.extract_strided_slice %103 {offsets = [0, 0], sizes = [1, 384], strides = [1, 1]} : vector<1x512xf32> to vector<1x384xf32>
    %105 = arith.negf %104 : vector<1x384xf32>
    %106 = math.exp %105 : vector<1x384xf32>
    %cst_42 = arith.constant 1.000000e+00 : f32
    %107 = vector.broadcast %cst_42 : f32 to vector<1x384xf32>
    %108 = arith.addf %107, %106 : vector<1x384xf32>
    %109 = arith.divf %107, %108 : vector<1x384xf32>
    %110 = vector.extract_strided_slice %109 {offsets = [0, 0], sizes = [1, 128], strides = [1, 1]} : vector<1x384xf32> to vector<1x128xf32>
    %111 = vector.extract_strided_slice %109 {offsets = [0, 128], sizes = [1, 128], strides = [1, 1]} : vector<1x384xf32> to vector<1x128xf32>
    %112 = vector.extract_strided_slice %109 {offsets = [0, 256], sizes = [1, 128], strides = [1, 1]} : vector<1x384xf32> to vector<1x128xf32>
    %113 = vector.extract_strided_slice %103 {offsets = [0, 384], sizes = [1, 128], strides = [1, 1]} : vector<1x512xf32> to vector<1x128xf32>
    %114 = math.tanh %113 : vector<1x128xf32>
    %115 = arith.mulf %111, %95 : vector<1x128xf32>
    %116 = arith.mulf %110, %114 : vector<1x128xf32>
    %117 = arith.addf %115, %116 : vector<1x128xf32>
    %118 = math.tanh %117 : vector<1x128xf32>
    %119 = arith.mulf %112, %118 : vector<1x128xf32>
    %c4_43 = arith.constant 4 : index
    %c0_44 = arith.constant 0 : index
    %120 = vector.load %arg11[%c4_43, %c0_44] : memref<8x128xf32, #tpu.memory_space<vmem>>, vector<1x128xf32>
    tpu.vector_store %arg11[%c4_43, %c0_44], %119 {strides = array<i32>} : memref<8x128xf32, #tpu.memory_space<vmem>>, vector<1x128xf32>,
    %c5 = arith.constant 5 : index
    %c0_45 = arith.constant 0 : index
    %121 = vector.load %arg10[%c5, %c0_45] : memref<8x512xf32, #tpu.memory_space<vmem>>, vector<1x512xf32>
    %122 = arith.truncf %119 : vector<1x128xf32> to vector<1x128xbf16>
    %c0_46 = arith.constant 0 : index
    %c0_47 = arith.constant 0 : index
    %123 = vector.load %arg4[%c0_46, %c0_47] : memref<128x512xbf16, #tpu.memory_space<vmem>>, vector<128x512xbf16>
    %cst_48 = arith.constant dense<0.000000e+00> : vector<1x512xf32>
    %124 = tpu.matmul %122, %123, %cst_48 {dimension_numbers = #tpu.dot_dimension_numbers<[1], [0], [0], [1], [0, 0, 1, 1], [], []>} : vector<1x128xbf16>, vector<128x512xbf16>, vector<1x512xf32> -> vector<1x512xf32>
    %125 = arith.addf %121, %124 : vector<1x512xf32>
    %126 = vector.extract_strided_slice %125 {offsets = [0, 0], sizes = [1, 384], strides = [1, 1]} : vector<1x512xf32> to vector<1x384xf32>
    %127 = arith.negf %126 : vector<1x384xf32>
    %128 = math.exp %127 : vector<1x384xf32>
    %cst_49 = arith.constant 1.000000e+00 : f32
    %129 = vector.broadcast %cst_49 : f32 to vector<1x384xf32>
    %130 = arith.addf %129, %128 : vector<1x384xf32>
    %131 = arith.divf %129, %130 : vector<1x384xf32>
    %132 = vector.extract_strided_slice %131 {offsets = [0, 0], sizes = [1, 128], strides = [1, 1]} : vector<1x384xf32> to vector<1x128xf32>
    %133 = vector.extract_strided_slice %131 {offsets = [0, 128], sizes = [1, 128], strides = [1, 1]} : vector<1x384xf32> to vector<1x128xf32>
    %134 = vector.extract_strided_slice %131 {offsets = [0, 256], sizes = [1, 128], strides = [1, 1]} : vector<1x384xf32> to vector<1x128xf32>
    %135 = vector.extract_strided_slice %125 {offsets = [0, 384], sizes = [1, 128], strides = [1, 1]} : vector<1x512xf32> to vector<1x128xf32>
    %136 = math.tanh %135 : vector<1x128xf32>
    %137 = arith.mulf %133, %117 : vector<1x128xf32>
    %138 = arith.mulf %132, %136 : vector<1x128xf32>
    %139 = arith.addf %137, %138 : vector<1x128xf32>
    %140 = math.tanh %139 : vector<1x128xf32>
    %141 = arith.mulf %134, %140 : vector<1x128xf32>
    %c5_50 = arith.constant 5 : index
    %c0_51 = arith.constant 0 : index
    %142 = vector.load %arg11[%c5_50, %c0_51] : memref<8x128xf32, #tpu.memory_space<vmem>>, vector<1x128xf32>
    tpu.vector_store %arg11[%c5_50, %c0_51], %141 {strides = array<i32>} : memref<8x128xf32, #tpu.memory_space<vmem>>, vector<1x128xf32>,
    %c6 = arith.constant 6 : index
    %c0_52 = arith.constant 0 : index
    %143 = vector.load %arg10[%c6, %c0_52] : memref<8x512xf32, #tpu.memory_space<vmem>>, vector<1x512xf32>
    %144 = arith.truncf %141 : vector<1x128xf32> to vector<1x128xbf16>
    %c0_53 = arith.constant 0 : index
    %c0_54 = arith.constant 0 : index
    %145 = vector.load %arg4[%c0_53, %c0_54] : memref<128x512xbf16, #tpu.memory_space<vmem>>, vector<128x512xbf16>
    %cst_55 = arith.constant dense<0.000000e+00> : vector<1x512xf32>
    %146 = tpu.matmul %144, %145, %cst_55 {dimension_numbers = #tpu.dot_dimension_numbers<[1], [0], [0], [1], [0, 0, 1, 1], [], []>} : vector<1x128xbf16>, vector<128x512xbf16>, vector<1x512xf32> -> vector<1x512xf32>
    %147 = arith.addf %143, %146 : vector<1x512xf32>
    %148 = vector.extract_strided_slice %147 {offsets = [0, 0], sizes = [1, 384], strides = [1, 1]} : vector<1x512xf32> to vector<1x384xf32>
    %149 = arith.negf %148 : vector<1x384xf32>
    %150 = math.exp %149 : vector<1x384xf32>
    %cst_56 = arith.constant 1.000000e+00 : f32
    %151 = vector.broadcast %cst_56 : f32 to vector<1x384xf32>
    %152 = arith.addf %151, %150 : vector<1x384xf32>
    %153 = arith.divf %151, %152 : vector<1x384xf32>
    %154 = vector.extract_strided_slice %153 {offsets = [0, 0], sizes = [1, 128], strides = [1, 1]} : vector<1x384xf32> to vector<1x128xf32>
    %155 = vector.extract_strided_slice %153 {offsets = [0, 128], sizes = [1, 128], strides = [1, 1]} : vector<1x384xf32> to vector<1x128xf32>
    %156 = vector.extract_strided_slice %153 {offsets = [0, 256], sizes = [1, 128], strides = [1, 1]} : vector<1x384xf32> to vector<1x128xf32>
    %157 = vector.extract_strided_slice %147 {offsets = [0, 384], sizes = [1, 128], strides = [1, 1]} : vector<1x512xf32> to vector<1x128xf32>
    %158 = math.tanh %157 : vector<1x128xf32>
    %159 = arith.mulf %155, %139 : vector<1x128xf32>
    %160 = arith.mulf %154, %158 : vector<1x128xf32>
    %161 = arith.addf %159, %160 : vector<1x128xf32>
    %162 = math.tanh %161 : vector<1x128xf32>
    %163 = arith.mulf %156, %162 : vector<1x128xf32>
    %c6_57 = arith.constant 6 : index
    %c0_58 = arith.constant 0 : index
    %164 = vector.load %arg11[%c6_57, %c0_58] : memref<8x128xf32, #tpu.memory_space<vmem>>, vector<1x128xf32>
    tpu.vector_store %arg11[%c6_57, %c0_58], %163 {strides = array<i32>} : memref<8x128xf32, #tpu.memory_space<vmem>>, vector<1x128xf32>,
    %c7 = arith.constant 7 : index
    %c0_59 = arith.constant 0 : index
    %165 = vector.load %arg10[%c7, %c0_59] : memref<8x512xf32, #tpu.memory_space<vmem>>, vector<1x512xf32>
    %166 = arith.truncf %163 : vector<1x128xf32> to vector<1x128xbf16>
    %c0_60 = arith.constant 0 : index
    %c0_61 = arith.constant 0 : index
    %167 = vector.load %arg4[%c0_60, %c0_61] : memref<128x512xbf16, #tpu.memory_space<vmem>>, vector<128x512xbf16>
    %cst_62 = arith.constant dense<0.000000e+00> : vector<1x512xf32>
    %168 = tpu.matmul %166, %167, %cst_62 {dimension_numbers = #tpu.dot_dimension_numbers<[1], [0], [0], [1], [0, 0, 1, 1], [], []>} : vector<1x128xbf16>, vector<128x512xbf16>, vector<1x512xf32> -> vector<1x512xf32>
    %169 = arith.addf %165, %168 : vector<1x512xf32>
    %170 = vector.extract_strided_slice %169 {offsets = [0, 0], sizes = [1, 384], strides = [1, 1]} : vector<1x512xf32> to vector<1x384xf32>
    %171 = arith.negf %170 : vector<1x384xf32>
    %172 = math.exp %171 : vector<1x384xf32>
    %cst_63 = arith.constant 1.000000e+00 : f32
    %173 = vector.broadcast %cst_63 : f32 to vector<1x384xf32>
    %174 = arith.addf %173, %172 : vector<1x384xf32>
    %175 = arith.divf %173, %174 : vector<1x384xf32>
    %176 = vector.extract_strided_slice %175 {offsets = [0, 0], sizes = [1, 128], strides = [1, 1]} : vector<1x384xf32> to vector<1x128xf32>
    %177 = vector.extract_strided_slice %175 {offsets = [0, 128], sizes = [1, 128], strides = [1, 1]} : vector<1x384xf32> to vector<1x128xf32>
    %178 = vector.extract_strided_slice %175 {offsets = [0, 256], sizes = [1, 128], strides = [1, 1]} : vector<1x384xf32> to vector<1x128xf32>
    %179 = vector.extract_strided_slice %169 {offsets = [0, 384], sizes = [1, 128], strides = [1, 1]} : vector<1x512xf32> to vector<1x128xf32>
    %180 = math.tanh %179 : vector<1x128xf32>
    %181 = arith.mulf %177, %161 : vector<1x128xf32>
    %182 = arith.mulf %176, %180 : vector<1x128xf32>
    %183 = arith.addf %181, %182 : vector<1x128xf32>
    %184 = math.tanh %183 : vector<1x128xf32>
    %185 = arith.mulf %178, %184 : vector<1x128xf32>
    %c7_64 = arith.constant 7 : index
    %c0_65 = arith.constant 0 : index
    %186 = vector.load %arg11[%c7_64, %c0_65] : memref<8x128xf32, #tpu.memory_space<vmem>>, vector<1x128xf32>
    tpu.vector_store %arg11[%c7_64, %c0_65], %185 {strides = array<i32>} : memref<8x128xf32, #tpu.memory_space<vmem>>, vector<1x128xf32>,
    %c0_66 = arith.constant 0 : index
    %c0_67 = arith.constant 0 : index
    %187 = vector.load %arg8[%c0_66, %c0_67] : memref<1x128xf32, #tpu.memory_space<vmem>>, vector<1x128xf32>
    tpu.vector_store %arg8[%c0_66, %c0_67], %185 {strides = array<i32>} : memref<1x128xf32, #tpu.memory_space<vmem>>, vector<1x128xf32>,
    %c0_68 = arith.constant 0 : index
    %c0_69 = arith.constant 0 : index
    %188 = vector.load %arg9[%c0_68, %c0_69] : memref<1x128xf32, #tpu.memory_space<vmem>>, vector<1x128xf32>
    tpu.vector_store %arg9[%c0_68, %c0_69], %183 {strides = array<i32>} : memref<1x128xf32, #tpu.memory_space<vmem>>, vector<1x128xf32>,
    %c0_70 = arith.constant 0 : index
    %c0_71 = arith.constant 0 : index
    %189 = vector.load %arg11[%c0_70, %c0_71] : memref<8x128xf32, #tpu.memory_space<vmem>>, vector<8x128xf32>
    %c0_72 = arith.constant 0 : index
    %c0_73 = arith.constant 0 : index
    %190 = vector.load %arg5[%c0_72, %c0_73] : memref<128x128xf32, #tpu.memory_space<vmem>>, vector<128x128xf32>
    %cst_74 = arith.constant dense<0.000000e+00> : vector<8x128xf32>
    %191 = tpu.matmul %189, %190, %cst_74 {dimension_numbers = #tpu.dot_dimension_numbers<[1], [0], [0], [1], [0, 0, 1, 1], [], []>} : vector<8x128xf32>, vector<128x128xf32>, vector<8x128xf32> -> vector<8x128xf32>
    %c0_75 = arith.constant 0 : index
    %c0_76 = arith.constant 0 : index
    %192 = vector.load %arg6[%c0_75, %c0_76] : memref<1x128xf32, #tpu.memory_space<vmem>>, vector<1x128xf32>
    %193 = vector.broadcast %192 : vector<1x128xf32> to vector<8x128xf32>
    %194 = arith.addf %191, %193 : vector<8x128xf32>
    %c0_77 = arith.constant 0 : index
    %c0_78 = arith.constant 0 : index
    %195 = vector.load %arg7[%c0_77, %c0_78] : memref<8x128xf32, #tpu.memory_space<vmem>>, vector<8x128xf32>
    tpu.vector_store %arg7[%c0_77, %c0_78], %194 {strides = array<i32>} : memref<8x128xf32, #tpu.memory_space<vmem>>, vector<8x128xf32>,
    return
  }
}

</mosaic_0001>

<bundles_post_ra>
// kernel: char_rnn_forward.1
= control target key start
LH: loop header
LB: loop body
LE: loop exit
PB: predicated region body
PF: predicated region fallthrough
CT: control target
= control target key end

     0   :  { %15 = vsyncpa [#allocation5], 0  ;;  %s4238_s0 = inlined_call_operand.vmem [shape: s32[8,1], index: 0, kind: input, shape index: {}]   ;;  %s4239_s1 = inlined_call_operand.hbm [shape: f32[32,512], index: 1, kind: input, shape index: {}]   ;;  %s4240_s2 = inlined_call_operand.vmem [shape: f32[1,128], index: 2, kind: input, shape index: {}, may-alias: {2,8}]   ;;  %s4241_s3 = inlined_call_operand.vmem [shape: f32[1,128], index: 3, kind: input, shape index: {}, may-alias: {3,9}]   ;;  %s4242_s4 = inlined_call_operand.hbm [shape: bf16[128,512], index: 4, kind: input, shape index: {}]   ;;  %s4243_s5 = inlined_call_operand.hbm [shape: f32[128,128], index: 5, kind: input, shape index: {}]   ;;  %s4244_s6 = inlined_call_operand.vmem [shape: f32[1,128], index: 6, kind: input, shape index: {}]   ;;  %s4245_s7 = inlined_call_operand.hbm [shape: f32[8,128], index: 7, kind: output, shape index: {0}]   ;;  %s4246_s8 = inlined_call_operand.vmem [shape: f32[1,128], index: 8, kind: output, shape index: {1}, may-alias: {2,8}]   ;;  %s4247_s9 = inlined_call_operand.vmem [shape: f32[1,128], index: 9, kind: output, shape index: {2}, may-alias: {3,9}]  }
   0x1   :  { %16 = vsyncpa [#allocation8], 0  ;;  %s41_s11 = sshll.u32 %s4242_s4, 4  ;;  %s42_s11 = int_to_ptr.hbm [resolvable:$true] %s41_s11 }
   0x2   :  { %17 = vsyncpa [#allocation6], 0  ;;  %s4081_s12 = smov [#allocation7]   ;;  %s24_s16 = sshll.u32 %s4239_s1, 4  ;;  %s25_s16 = int_to_ptr.hbm [resolvable:$true] %s24_s16 }
   0x3   :  { %s43_s13 = sshll.u32 %s4081_s12, 4  ;;  %s4082_s17 = smov 256   ;;  %s44_s13 = int_to_ptr.vmem [resolvable:$true] %s43_s13 }
   0x4   :  { %s4083_s18 = smov 16   ;;  %s4084_s19 = smov [#allocation4]  }
   0x5   :  { %49 = dma.hbm_to_vmem [thread:$0]  %s42_s11, 4096, %s44_s13, [#allocation8], %s4082_s17, %s4082_s17, %s4083_s18  }
   0x6   :  { %s26_s20 = sshll.u32 %s4084_s19, 4  ;;  %s4085_s21 = smov 512   ;;  %s27_s20 = int_to_ptr.vmem [resolvable:$true] %s26_s20 }
   0x7   :  { %s4086_s22 = smov 32   ;;  %s54_s24 = sshll.u32 %s4243_s5, 4  ;;  %s55_s24 = int_to_ptr.hbm [resolvable:$true] %s54_s24 }
   0x8   :  { %32 = dma.hbm_to_vmem [thread:$0]  %s25_s16, 2048, %s27_s20, [#allocation5], %s4085_s21, %s4085_s21, %s4086_s22  }
   0x9   :  { %s4087_s25 = smov [#allocation9]   ;;  %s4088_s27 = smov 128  }
   0xa   :  { %s56_s26 = sshll.u32 %s4087_s25, 4  ;;  %s4089_s1 = smov 8   ;;  %s57_s26 = int_to_ptr.vmem [resolvable:$true] %s56_s26 }
   0xb   :  { %62 = dma.hbm_to_vmem [thread:$0]  %s55_s24, 2048, %s57_s26, [#allocation8], %s4088_s27, %s4088_s27, %s4089_s1  }
   0xc   :  { %4075 = dma.done.wait [#allocation5], 2048  }
   0xd   :  { %4076 = vsyncadd [#allocation5], 4294965248 }
   0xe   :  { %4077 = dma.done.wait [#allocation8], 6144  }
   0xf   :  { %4078 = vsyncadd [#allocation8], 4294961152  ;;  %v4090_v0 = vmov 0   ;;  %v77_v1 = vld [vmem:[%s4238_s0] sm:$0xff]  ;;  %v100_v2 = vld [vmem:[#allocation4 + $0x70] sm:$0xff]  ;;  %vm102_vm0 = vcmask 261120  }
  0x10   :  { %3913 = vset.pattern.permute.xlu0 %v4090_v0  ;;  %v101_v3 = vld [vmem:[#allocation4 + $0x78] sm:$0xff]  ;;  %158 = vmatpush.msra.mxu2 %v100_v2  ;;  %v96_v4 = vld [vmem:[#allocation4 + $0x50] sm:$0xff]  ;;  %v98_v9 = vld [vmem:[#allocation4 + $0x60] sm:$0xff]  ;;  %vm447_vm2 = vcmask 1042434   ;;  %vm445_vm3 = vcmask 1040384   ;;  %vm449_vm4 = vcmask 1041408  }
  0x11   :  { %81 = vperm.xlu0 %3913, %v77_v1   ;;  %v97_v5 = vld [vmem:[#allocation4 + $0x58] sm:$0xff]  ;;  %178 = vmatpush.msra.mxu3 %v101_v3  ;;  %v92_v6 = vld [vmem:[#allocation4 + $0x30] sm:$0xff]  ;;  %v2735_v10 = vld [vmem:[#allocation7 + $0xe8] sm:$0xf]  ;;  %s4092_s15 = smov [#allocation10]   ;;  %s2589_s18 = sshll.u32 %s4245_s7, 4  ;;  %s2590_s18 = int_to_ptr.hbm [resolvable:$true] %s2589_s18 }
  0x12   :  { %v93_v7 = vld [vmem:[#allocation4 + $0x38] sm:$0xff]  ;;  %v88_v8 = vld [vmem:[#allocation4 + $0x10] sm:$0xff]  ;;  %159 = vmatpush.msra.mxu2 %v96_v4  ;;  %118 = vmatpush.msra.mxu1 %v98_v9  ;;  %v3674_v13 = vld [vmem:[#allocation7 + $0xec] sm:$0xf]  ;;  %s2587_s16 = sshll.u32 %s4092_s15, 4  ;;  %s2588_s16 = int_to_ptr.vmem [resolvable:$true] %s2587_s16 }
  0x13   :  { %v3676_v11 = vld [vmem:[#allocation7 + $0xf4] sm:$0xf0]  ;;  %179 = vmatpush.msra.mxu3 %v97_v5  ;;  %v2737_v14 = vld [vmem:[#allocation7 + $0xf8] sm:$0xf0]  ;;  %v94_v15 = vld [vmem:[#allocation4 + $0x40] sm:$0xff] }
  0x14   :  { %v2736_v12 = vor.u32 %v3676_v11, %v2735_v10  ;;  %160 = vmatpush.msra.mxu2 %v92_v6  ;;  %v89_v16 = vld [vmem:[#allocation4 + $0x18] sm:$0xff]  ;;  %v2740_v17 = vor.u32 %v3674_v13, %v2737_v14  ;;  %v2719_v18 = vld [vmem:[#allocation7 + $0xc8] sm:$0xf]  ;;  %119 = vmatpush.msra.mxu1 %v94_v15  ;;  %v90_v20 = vld [vmem:[#allocation4 + $0x20] sm:$0xff] }
  0x15   :  { %v3672_v19 = vld [vmem:[#allocation7 + $0xd4] sm:$0xf0]  ;;  %180 = vmatpush.msra.mxu3 %v93_v7  ;;  %v3670_v21 = vld [vmem:[#allocation7 + $0xcc] sm:$0xf]  ;;  %v2721_v22 = vld [vmem:[#allocation7 + $0xd8] sm:$0xf0] }
  0x16   :  { %161 = vmatpush.msra.mxu2 %v88_v8  ;;  %v2727_v23 = vld [vmem:[#allocation7 + $0xe0] sm:$0xf]  ;;  %v3675_v24 = vld [vmem:[#allocation7 + $0xec] sm:$0xf0]  ;;  %v2720_v25 = vor.u32 %v3672_v19, %v2719_v18  ;;  %120 = vmatpush.msra.mxu1 %v90_v20  ;;  %v2724_v28 = vor.u32 %v3670_v21, %v2721_v22  ;;  %v99_v29 = vld [vmem:[#allocation4 + $0x68] sm:$0xff] }
  0x17   :  { %181 = vmatpush.msra.mxu3 %v89_v16  ;;  %v86_v26 = vld [vmem:[#allocation4] sm:$0xff]  ;;  %v2728_v27 = vor.u32 %v3675_v24, %v2727_v23  ;;  %v2703_v30 = vld [vmem:[#allocation7 + $0xa8] sm:$0xf]  ;;  %v3668_v31 = vld [vmem:[#allocation7 + $0xb4] sm:$0xf0] }
  0x18   :  { %412 = vmatpush.bf16.msrb.mxu2 %v2736_v12  ;;  %v3666_v32 = vld [vmem:[#allocation7 + $0xac] sm:$0xf]  ;;  %v2705_v33 = vld [vmem:[#allocation7 + $0xb8] sm:$0xf0]  ;;  %121 = vmatpush.msra.mxu1 %v86_v26  ;;  %v2704_v35 = vor.u32 %v3668_v31, %v2703_v30  ;;  %v2711_v38 = vld [vmem:[#allocation7 + $0xc0] sm:$0xf] }
  0x19   :  { %425 = vmatpush.bf16.msrb.mxu3 %v2740_v17  ;;  %386 = vmatpush.bf16.msra.mxu0 %v2728_v27  ;;  %v95_v34 = vld [vmem:[#allocation4 + $0x48] sm:$0xff]  ;;  %v2708_v36 = vor.u32 %v3666_v32, %v2705_v33  ;;  %v3671_v39 = vld [vmem:[#allocation7 + $0xcc] sm:$0xf0]  ;;  %v3664_v42 = vld [vmem:[#allocation7 + $0x94] sm:$0xf0]  ;;  %v78_v27 = vlaneseq }
  0x1a   :  { %138 = vmatpush.msrb.mxu1 %v99_v29  ;;  %v91_v37 = vld [vmem:[#allocation4 + $0x28] sm:$0xff]  ;;  %v2712_v41 = vor.u32 %v3671_v39, %v2711_v38  ;;  %v2689_v44 = vld [vmem:[#allocation7 + $0x98] sm:$0xf0]  ;;  %v2695_v48 = vld [vmem:[#allocation7 + $0xa0] sm:$0xf] }
  0x1b   :  { %v2687_v40 = vld [vmem:[#allocation7 + $0x88] sm:$0xf]  ;;  %v3662_v43 = vld [vmem:[#allocation7 + $0x8c] sm:$0xf]  ;;  %v3667_v49 = vld [vmem:[#allocation7 + $0xac] sm:$0xf0] }
  0x1c   :  { %413 = vmatpush.bf16.msrb.mxu2 %v2720_v25  ;;  %139 = vmatpush.msrb.mxu1 %v95_v34  ;;  %v2688_v45 = vor.u32 %v3664_v42, %v2687_v40  ;;  %v2692_v46 = vor.u32 %v3662_v43, %v2689_v44  ;;  %v87_v47 = vld [vmem:[#allocation4 + $0x8] sm:$0xff]  ;;  %v2696_v51 = vor.u32 %v3667_v49, %v2695_v48  ;;  %v3660_v52 = vld [vmem:[#allocation7 + $0x74] sm:$0xf0]  ;;  %v2673_v54 = vld [vmem:[#allocation7 + $0x78] sm:$0xf0]  ;;  %v79_v29 = vand.u32 127, %v78_v27 }
  0x1d   :  { %426 = vmatpush.bf16.msrb.mxu3 %v2724_v28  ;;  %387 = vmatpush.bf16.msra.mxu0 %v2712_v41  ;;  %v2671_v50 = vld [vmem:[#allocation7 + $0x68] sm:$0xf]  ;;  %v3658_v53 = vld [vmem:[#allocation7 + $0x6c] sm:$0xf]  ;;  %v2679_v57 = vld [vmem:[#allocation7 + $0x80] sm:$0xf] }
  0x1e   :  { %140 = vmatpush.msrb.mxu1 %v91_v37  ;;  %v2672_v55 = vor.u32 %v3660_v52, %v2671_v50  ;;  %v2676_v56 = vor.u32 %v3658_v53, %v2673_v54  ;;  %v3663_v58 = vld [vmem:[#allocation7 + $0x8c] sm:$0xf0]  ;;  %v2655_v59 = vld [vmem:[#allocation7 + $0x48] sm:$0xf]  ;;  %v3656_v61 = vld [vmem:[#allocation7 + $0x54] sm:$0xf0] }
  0x1f   :  { %v2680_v60 = vor.u32 %v3663_v58, %v2679_v57  ;;  %v3654_v62 = vld [vmem:[#allocation7 + $0x4c] sm:$0xf]  ;;  %v2657_v63 = vld [vmem:[#allocation7 + $0x58] sm:$0xf0]  ;;  %v2656_v0 = vor.u32 %v3656_v61, %v2655_v59  ;;  %v2663_v2 = vld [vmem:[#allocation7 + $0x60] sm:$0xf] }
  0x20   :  { %414 = vmatpush.bf16.msrb.mxu2 %v2704_v35  ;;  %141 = vmatpush.msrb.mxu1 %v87_v47  ;;  %v2660_v1 = vor.u32 %v3654_v62, %v2657_v63  ;;  %v3659_v3 = vld [vmem:[#allocation7 + $0x6c] sm:$0xf0]  ;;  %v2639_v4 = vld [vmem:[#allocation7 + $0x28] sm:$0xf]  ;;  %v3652_v6 = vld [vmem:[#allocation7 + $0x34] sm:$0xf0] }
  0x21   :  { %427 = vmatpush.bf16.msrb.mxu3 %v2708_v36  ;;  %388 = vmatpush.bf16.msra.mxu0 %v2696_v51  ;;  %v2664_v5 = vor.u32 %v3659_v3, %v2663_v2  ;;  %v3650_v7 = vld [vmem:[#allocation7 + $0x2c] sm:$0xf]  ;;  %v2641_v8 = vld [vmem:[#allocation7 + $0x38] sm:$0xf0]  ;;  %v2640_v9 = vor.u32 %v3652_v6, %v2639_v4  ;;  %v2647_v11 = vld [vmem:[#allocation7 + $0x40] sm:$0xf] }
  0x22   :  { %v2644_v10 = vor.u32 %v3650_v7, %v2641_v8  ;;  %v3655_v12 = vld [vmem:[#allocation7 + $0x4c] sm:$0xf0]  ;;  %v2623_v13 = vld [vmem:[#allocation7 + $0x8] sm:$0xf]  ;;  %v3648_v15 = vld [vmem:[#allocation7 + $0x14] sm:$0xf0] }
  0x23   :  { %v2648_v14 = vor.u32 %v3655_v12, %v2647_v11  ;;  %v3646_v16 = vld [vmem:[#allocation7 + $0xc] sm:$0xf]  ;;  %v2625_v17 = vld [vmem:[#allocation7 + $0x18] sm:$0xf0]  ;;  %v2624_v18 = vor.u32 %v3648_v15, %v2623_v13  ;;  %v2631_v20 = vld [vmem:[#allocation7 + $0x20] sm:$0xf] }
  0x24   :  { %415 = vmatpush.bf16.msrb.mxu2 %v2688_v45  ;;  %v2628_v19 = vor.u32 %v3646_v16, %v2625_v17  ;;  %v3651_v21 = vld [vmem:[#allocation7 + $0x2c] sm:$0xf0]  ;;  %v2615_v23 = vld [vmem:[#allocation7] sm:$0xf]  ;;  %v190_v25 = vld [vmem:[%s4240_s2] sm:$0x1] }
  0x25   :  { %428 = vmatpush.bf16.msrb.mxu3 %v2692_v46  ;;  %389 = vmatpush.bf16.msra.mxu0 %v2680_v60  ;;  %v2632_v22 = vor.u32 %v3651_v21, %v2631_v20  ;;  %v3647_v24 = vld [vmem:[#allocation7 + $0xc] sm:$0xf0]  ;;  %v193_v28 = vpack.c.bf16 %v190_v25, %v190_v25  ;;  %v3673_v30 = vld [vmem:[#allocation7 + $0xe4] sm:$0xf]  ;;  %v2729_v31 = vld [vmem:[#allocation7 + $0xf0] sm:$0xf0] }
  0x26   :  { %v2616_v26 = vor.u32 %v3647_v24, %v2615_v23  ;;  %v2732_v33 = vor.u32 %v3673_v30, %v2729_v31  ;;  %v3669_v34 = vld [vmem:[#allocation7 + $0xc4] sm:$0xf]  ;;  %v2713_v35 = vld [vmem:[#allocation7 + $0xd0] sm:$0xf0]  ;;  %v4091_v36 = vmov 0.0  }
  0x27   :  { %v2716_v38 = vor.u32 %v3669_v34, %v2713_v35  ;;  %v3665_v39 = vld [vmem:[#allocation7 + $0xa4] sm:$0xf]  ;;  %v2697_v40 = vld [vmem:[#allocation7 + $0xb0] sm:$0xf0]  ;;  %v3707_v2 = vld [vmem:[#allocation7 + $0xec] sm:$0xf0] }
  0x28   :  { %416 = vmatpush.bf16.msrb.mxu2 %v2672_v55  ;;  %v2700_v41 = vor.u32 %v3665_v39, %v2697_v40  ;;  %v3661_v42 = vld [vmem:[#allocation7 + $0x84] sm:$0xf]  ;;  %v2681_v43 = vld [vmem:[#allocation7 + $0x90] sm:$0xf0]  ;;  %v2864_v6 = vld [vmem:[#allocation7 + $0xe8] sm:$0xf] }
  0x29   :  { %429 = vmatpush.bf16.msrb.mxu3 %v2676_v56  ;;  %390 = vmatpush.bf16.msra.mxu0 %v2664_v5  ;;  %v2684_v44 = vor.u32 %v3661_v42, %v2681_v43  ;;  %v3657_v45 = vld [vmem:[#allocation7 + $0x64] sm:$0xf]  ;;  %v2665_v46 = vld [vmem:[#allocation7 + $0x70] sm:$0xf0]  ;;  %v3708_v7 = vld [vmem:[#allocation7 + $0xf4] sm:$0xf0] }
  0x2a   :  { %v2668_v47 = vor.u32 %v3657_v45, %v2665_v46  ;;  %v3653_v48 = vld [vmem:[#allocation7 + $0x44] sm:$0xf]  ;;  %v2649_v49 = vld [vmem:[#allocation7 + $0x50] sm:$0xf0]  ;;  %v2866_v11 = vld [vmem:[#allocation7 + $0xf8] sm:$0xf0] }
  0x2b   :  { %v2652_v50 = vor.u32 %v3653_v48, %v2649_v49  ;;  %v3649_v51 = vld [vmem:[#allocation7 + $0x24] sm:$0xf]  ;;  %v2633_v52 = vld [vmem:[#allocation7 + $0x30] sm:$0xf0]  ;;  %v2840_v12 = vld [vmem:[#allocation7 + $0xc0] sm:$0xf] }
  0x2c   :  { %417 = vmatpush.bf16.msrb.mxu2 %v2656_v0  ;;  %v2636_v53 = vor.u32 %v3649_v51, %v2633_v52  ;;  %v3645_v54 = vld [vmem:[#allocation7 + $0x4] sm:$0xf]  ;;  %v2617_v55 = vld [vmem:[#allocation7 + $0x10] sm:$0xf0]  ;;  %v2848_v20 = vld [vmem:[#allocation7 + $0xc8] sm:$0xf] }
  0x2d   :  { %430 = vmatpush.bf16.msrb.mxu3 %v2660_v1  ;;  %391 = vmatpush.bf16.msra.mxu0 %v2648_v14  ;;  %v2620_v56 = vor.u32 %v3645_v54, %v2617_v55  ;;  %v2856_v1 = vld [vmem:[#allocation7 + $0xe0] sm:$0xf]  ;;  %v3705_v3 = vld [vmem:[#allocation7 + $0xe4] sm:$0xf]  ;;  %v2858_v5 = vld [vmem:[#allocation7 + $0xf0] sm:$0xf0] }
  0x2e   :  { %v2857_v4 = vor.u32 %v3707_v2, %v2856_v1  ;;  %v2861_v8 = vor.u32 %v3705_v3, %v2858_v5  ;;  %v3703_v14 = vld [vmem:[#allocation7 + $0xcc] sm:$0xf0]  ;;  %v3701_v15 = vld [vmem:[#allocation7 + $0xc4] sm:$0xf]  ;;  %v2842_v16 = vld [vmem:[#allocation7 + $0xd0] sm:$0xf0] }
  0x2f   :  { %v3704_v21 = vld [vmem:[#allocation7 + $0xd4] sm:$0xf0]  ;;  %v2850_v25 = vld [vmem:[#allocation7 + $0xd8] sm:$0xf0]  ;;  %v3699_v27 = vld [vmem:[#allocation7 + $0xac] sm:$0xf0] }
  0x30   :  { %418 = vmatpush.bf16.msrb.mxu2 %v2640_v9  ;;  %v2865_v9 = vor.u32 %v3708_v7, %v2864_v6  ;;  %v2849_v24 = vor.u32 %v3704_v21, %v2848_v20  ;;  %v2826_v30 = vld [vmem:[#allocation7 + $0xb0] sm:$0xf0]  ;;  %v2832_v31 = vld [vmem:[#allocation7 + $0xa8] sm:$0xf]  ;;  %v3698_v34 = vld [vmem:[#allocation7 + $0xac] sm:$0xf] }
  0x31   :  { %431 = vmatpush.bf16.msrb.mxu3 %v2644_v10  ;;  %392 = vmatpush.bf16.msra.mxu0 %v2632_v22  ;;  %v3706_v10 = vld [vmem:[#allocation7 + $0xec] sm:$0xf]  ;;  %v2834_v35 = vld [vmem:[#allocation7 + $0xb8] sm:$0xf0]  ;;  %v3695_v39 = vld [vmem:[#allocation7 + $0x8c] sm:$0xf0] }
  0x32   :  { %v2869_v13 = vor.u32 %v3706_v10, %v2866_v11  ;;  %v3702_v22 = vld [vmem:[#allocation7 + $0xcc] sm:$0xf]  ;;  %v3693_v40 = vld [vmem:[#allocation7 + $0x84] sm:$0xf]  ;;  %v2810_v42 = vld [vmem:[#allocation7 + $0x90] sm:$0xf0] }
  0x33   :  { %v2816_v43 = vld [vmem:[#allocation7 + $0x88] sm:$0xf]  ;;  %v3694_v45 = vld [vmem:[#allocation7 + $0x8c] sm:$0xf]  ;;  %v2818_v46 = vld [vmem:[#allocation7 + $0x98] sm:$0xf0] }
  0x34   :  { %419 = vmatpush.bf16.msrb.mxu2 %v2624_v18  ;;  %v2841_v18 = vor.u32 %v3703_v14, %v2840_v12  ;;  %v2792_v52 = vld [vmem:[#allocation7 + $0x60] sm:$0xf]  ;;  %v3689_v54 = vld [vmem:[#allocation7 + $0x64] sm:$0xf]  ;;  %v2821_v55 = vor.u32 %v3694_v45, %v2818_v46  ;;  %v3687_v6 = vld [vmem:[#allocation7 + $0x4c] sm:$0xf0] }
  0x35   :  { %432 = vmatpush.bf16.msrb.mxu3 %v2628_v19  ;;  %393 = vmatpush.bf16.msra.mxu0 %v2616_v26  ;;  %v2845_v19 = vor.u32 %v3701_v15, %v2842_v16  ;;  %v2824_v26 = vld [vmem:[#allocation7 + $0xa0] sm:$0xf]  ;;  %v3685_v7 = vld [vmem:[#allocation7 + $0x44] sm:$0xf]  ;;  %v2778_v10 = vld [vmem:[#allocation7 + $0x50] sm:$0xf0] }
  0x36   :  { %v2776_v5 = vld [vmem:[#allocation7 + $0x40] sm:$0xf]  ;;  %v2784_v11 = vld [vmem:[#allocation7 + $0x48] sm:$0xf]  ;;  %v3688_v12 = vld [vmem:[#allocation7 + $0x54] sm:$0xf0] }
  0x37   :  { %v3686_v14 = vld [vmem:[#allocation7 + $0x4c] sm:$0xf]  ;;  %v2786_v15 = vld [vmem:[#allocation7 + $0x58] sm:$0xf0]  ;;  %v2785_v20 = vor.u32 %v3688_v12, %v2784_v11  ;;  %v3683_v21 = vld [vmem:[#allocation7 + $0x2c] sm:$0xf0] }
  0x38   :  { %394 = vmatmul.bf16.vlgmr.msra.gmra.mxu0 %v193_v28  ;;  %v2993_v11 = vld [vmem:[#allocation7 + $0xe8] sm:$0xf]  ;;  %v3740_v12 = vld [vmem:[#allocation7 + $0xf4] sm:$0xf0] }
  0x39   :  { %682 = vmatpush.bf16.msrb.mxu0 %v2857_v4 }
  0x3d   :  { %683 = vmatpush.bf16.msrb.mxu0 %v2841_v18  ;;  %v2760_v18 = vld [vmem:[#allocation7 + $0x20] sm:$0xf] }
  0x83   :  { %v82_v32 = vpop.permute.xlu0 %81 }
  0x84   :  { %vm83_vm1 = vcmp.eq.s32.totalorder %v79_v29, %v82_v32  ;;  %v3697_v29 = vld [vmem:[#allocation7 + $0xa4] sm:$0xf]  ;;  %v2825_v32 = vor.u32 %v3699_v27, %v2824_v26  ;;  %v3684_v26 = vld [vmem:[#allocation7 + $0x34] sm:$0xf0] }
  0x85   :  { %v2608_v37 = vsel %vm83_vm1, 1.0, %v4091_v36  ;;  %v2829_v36 = vor.u32 %v3697_v29, %v2826_v30  ;;  %v2770_v29 = vld [vmem:[#allocation7 + $0x38] sm:$0xf0]  ;;  %v2761_v30 = vor.u32 %v3683_v21, %v2760_v18  ;;  %v2971_v21 = vld [vmem:[#allocation7 + $0xd0] sm:$0xf0] }
  0x86   :  { %2609 = vmatmul.msk.f32.vlgmr.msra.gmra.mxu1 %vm102_vm0, %v2608_v37  ;;  %2611 = vmatmul.msk.f32.vlgmr.msra.gmra.mxu2 %vm102_vm0, %v2608_v37 }
  0x87   :  { %2612 = vmatmul.msk.f32.vlgmr.msra.gmra.mxu3 %vm102_vm0, %v2608_v37  ;;  %399 = vmatpush.bf16.msra.mxu1 %v2732_v33  ;;  %v3700_v33 = vld [vmem:[#allocation7 + $0xb4] sm:$0xf0] }
  0x88   :  { %708 = vmatpush.bf16.msra.mxu2 %v2865_v9  ;;  %721 = vmatpush.bf16.msra.mxu3 %v2869_v13 }
  0x89   :  { %684 = vmatpush.bf16.msrb.mxu0 %v2825_v32 }
  0x8b   :  { %400 = vmatpush.bf16.msra.mxu1 %v2716_v38  ;;  %v2808_v38 = vld [vmem:[#allocation7 + $0x80] sm:$0xf] }
  0x8c   :  { %709 = vmatpush.bf16.msra.mxu2 %v2849_v24  ;;  %v2809_v49 = vor.u32 %v3695_v39, %v2808_v38  ;;  %v2789_v24 = vor.u32 %v3686_v14, %v2786_v15  ;;  %v2752_v38 = vld [vmem:[#allocation7 + $0x8] sm:$0xf]  ;;  %v3680_v39 = vld [vmem:[#allocation7 + $0x14] sm:$0xf0]  ;;  %v2994_v14 = vor.u32 %v3740_v12, %v2993_v11  ;;  %v3738_v15 = vld [vmem:[#allocation7 + $0xec] sm:$0xf] }
  0x8d   :  { %v2905_v12 = vld [vmem:[#allocation7 + $0x40] sm:$0xf] }
  0x8e   :  { %2610 = vmatmul.msk.f32.vlgmr.msrb.gmra.mxu1 %vm102_vm0, %v2608_v37  ;;  %420 = vmatmul.bf16.vlgmr.msrb.gmra.mxu2 %v193_v28  ;;  %v2833_v37 = vor.u32 %v3700_v33, %v2832_v31  ;;  %v2744_v33 = vld [vmem:[#allocation7] sm:$0xf] }
  0x8f   :  { %401 = vmatpush.bf16.msra.mxu1 %v2700_v41  ;;  %433 = vmatmul.bf16.vlgmr.msrb.gmra.mxu3 %v193_v28  ;;  %v2837_v41 = vor.u32 %v3698_v34, %v2834_v35  ;;  %v3679_v34 = vld [vmem:[#allocation7 + $0xc] sm:$0xf0]  ;;  %v3677_v35 = vld [vmem:[#allocation7 + $0x4] sm:$0xf] }
  0x90   :  { %710 = vmatpush.bf16.msra.mxu2 %v2833_v37  ;;  %685 = vmatpush.bf16.msrb.mxu0 %v2809_v49  ;;  %v2746_v37 = vld [vmem:[#allocation7 + $0x10] sm:$0xf0] }
  0x93   :  { %402 = vmatpush.bf16.msra.mxu1 %v2684_v44  ;;  %v3696_v44 = vld [vmem:[#allocation7 + $0x94] sm:$0xf0] }
  0x94   :  { %v2817_v51 = vor.u32 %v3696_v44, %v2816_v43  ;;  %v2749_v43 = vor.u32 %v3677_v35, %v2746_v37  ;;  %v2753_v44 = vor.u32 %v3680_v39, %v2752_v38  ;;  %v3732_v37 = vld [vmem:[#allocation7 + $0xb4] sm:$0xf0]  ;;  %v3730_v38 = vld [vmem:[#allocation7 + $0xac] sm:$0xf]  ;;  %v2963_v39 = vld [vmem:[#allocation7 + $0xb8] sm:$0xf0] }
  0x96   :  { %711 = vmatpush.bf16.msra.mxu2 %v2817_v51 }
  0x97   :  { %403 = vmatpush.bf16.msra.mxu1 %v2668_v47 }
  0x9b   :  { %404 = vmatpush.bf16.msra.mxu1 %v2652_v50  ;;  %v2813_v50 = vor.u32 %v3693_v40, %v2810_v42  ;;  %v3678_v40 = vld [vmem:[#allocation7 + $0xc] sm:$0xf]  ;;  %v2745_v42 = vor.u32 %v3679_v34, %v2744_v33  ;;  %v2961_v33 = vld [vmem:[#allocation7 + $0xa8] sm:$0xf] }
  0x9f   :  { %405 = vmatpush.bf16.msra.mxu1 %v2636_v53  ;;  %v3691_v53 = vld [vmem:[#allocation7 + $0x6c] sm:$0xf0] }
  0xa0   :  { %v2793_v1 = vor.u32 %v3691_v53, %v2792_v52 }
  0xa2   :  { %686 = vmatpush.bf16.msrb.mxu0 %v2793_v1 }
  0xa3   :  { %406 = vmatpush.bf16.msra.mxu1 %v2620_v56  ;;  %v2794_v56 = vld [vmem:[#allocation7 + $0x70] sm:$0xf0] }
  0xa4   :  { %v2797_v3 = vor.u32 %v3689_v54, %v2794_v56 }
  0xa6   :  { %407 = vmatmul.bf16.vlgmr.msra.gmra.mxu1 %v193_v28  ;;  %v2853_v28 = vor.u32 %v3702_v22, %v2850_v25  ;;  %v3681_v22 = vld [vmem:[#allocation7 + $0x24] sm:$0xf]  ;;  %v2768_v25 = vld [vmem:[#allocation7 + $0x28] sm:$0xf] }
  0xa7   :  { %695 = vmatpush.bf16.msrb.mxu1 %v2861_v8  ;;  %v2769_v32 = vor.u32 %v3684_v26, %v2768_v25  ;;  %v3734_v25 = vld [vmem:[#allocation7 + $0xcc] sm:$0xf] }
  0xa8   :  { %722 = vmatpush.bf16.msra.mxu3 %v2853_v28  ;;  %v3682_v28 = vld [vmem:[#allocation7 + $0x2c] sm:$0xf] }
  0xab   :  { %696 = vmatpush.bf16.msrb.mxu1 %v2845_v19  ;;  %v2781_v19 = vor.u32 %v3685_v7, %v2778_v10  ;;  %v3739_v7 = vld [vmem:[#allocation7 + $0xec] sm:$0xf0]  ;;  %v2987_v10 = vld [vmem:[#allocation7 + $0xf0] sm:$0xf0] }
  0xac   :  { %723 = vmatpush.bf16.msra.mxu3 %v2837_v41  ;;  %v2754_v41 = vld [vmem:[#allocation7 + $0x18] sm:$0xf0] }
  0xad   :  { %v2757_v46 = vor.u32 %v3678_v40, %v2754_v41  ;;  %v2962_v41 = vor.u32 %v3732_v37, %v2961_v33  ;;  %v2897_v33 = vld [vmem:[#allocation7 + $0x28] sm:$0xf]  ;;  %v3714_v37 = vld [vmem:[#allocation7 + $0x2c] sm:$0xf] }
  0xaf   :  { %697 = vmatpush.bf16.msrb.mxu1 %v2829_v36  ;;  %v2773_v36 = vor.u32 %v3682_v28, %v2770_v29  ;;  %v2953_v28 = vld [vmem:[#allocation7 + $0xa0] sm:$0xf]  ;;  %v3731_v29 = vld [vmem:[#allocation7 + $0xac] sm:$0xf0] }
  0xb0   :  { %724 = vmatpush.bf16.msra.mxu3 %v2821_v55 }
  0xb3   :  { %698 = vmatpush.bf16.msrb.mxu1 %v2813_v50 }
  0xb5   :  { %v4162_v57 = vpop.f32.mrf.mxu0 }
  0xb7   :  { %699 = vmatpush.bf16.msrb.mxu1 %v2797_v3 }
  0xbb   :  { %700 = vmatpush.bf16.msrb.mxu1 %v2781_v19  ;;  %v3735_v19 = vld [vmem:[#allocation7 + $0xcc] sm:$0xf0] }
  0xbd   :  { %v397_v59 = vpop.f32.mrf.mxu0 }
  0xbe   :  { %v3692_v59 = vld [vmem:[#allocation7 + $0x74] sm:$0xf0] }
 0x103   :  { %v123_v58 = vpop.f32.mrf.mxu1 }
 0x104   :  { %186 = vst [vmem:[#allocation2] sm:$0xff] %v123_v58  ;;  %v2800_v58 = vld [vmem:[#allocation7 + $0x68] sm:$0xf] }
 0x105   :  { %v2801_v4 = vor.u32 %v3692_v59, %v2800_v58  ;;  %v191_v59 = vld [vmem:[%s4241_s3] sm:$0x1] }
 0x107   :  { %712 = vmatpush.bf16.msra.mxu2 %v2801_v4 }
 0x109   :  { %v163_v60 = vpop.f32.mrf.mxu2 }
 0x10a   :  { %188 = vst [vmem:[#allocation2 + $0x10] sm:$0xff] %v163_v60  ;;  %v183_v61 = vpop.f32.mrf.mxu3 }
 0x10b   :  { %189 = vst [vmem:[#allocation2 + $0x18] sm:$0xff] %v183_v61  ;;  %v143_v62 = vpop.f32.mrf.mxu1  ;;  %v3690_v61 = vld [vmem:[#allocation7 + $0x6c] sm:$0xf]  ;;  %713 = vmatpush.bf16.msra.mxu2 %v2785_v20  ;;  %v3733_v20 = vld [vmem:[#allocation7 + $0xc4] sm:$0xf] }
 0x10c   :  { %187 = vst [vmem:[#allocation2 + $0x8] sm:$0xff] %v143_v62  ;;  %v2802_v62 = vld [vmem:[#allocation7 + $0x78] sm:$0xf0] }
 0x10d   :  { %v2805_v9 = vor.u32 %v3690_v61, %v2802_v62 }
 0x10f   :  { %725 = vmatpush.bf16.msra.mxu3 %v2805_v9  ;;  %714 = vmatpush.bf16.msra.mxu2 %v2769_v32  ;;  %v2955_v32 = vld [vmem:[#allocation7 + $0xb0] sm:$0xf0] }
 0x111   :  { %v4164_v63 = vpop.f32.mrf.mxu2 }
 0x112   :  { %v4166_v0 = vpop.f32.mrf.mxu3  ;;  %v443_v47 = vrot.slane %v4164_v63, 6 }
 0x113   :  { %v444_v48 = vrot.slane %v4166_v0, 5  ;;  %v192_v2 = vld [vmem:[#allocation2] ss:$8 sm:$0xf]  ;;  %726 = vmatpush.bf16.msra.mxu3 %v2789_v24  ;;  %715 = vmatpush.bf16.msra.mxu2 %v2753_v44  ;;  %v2966_v44 = vor.u32 %v3730_v38, %v2963_v39  ;;  %v2899_v38 = vld [vmem:[#allocation7 + $0x38] sm:$0xf0] }
 0x114   :  { %v3736_v24 = vld [vmem:[#allocation7 + $0xd4] sm:$0xf0] }
 0x115   :  { %v448_v63 = vsel %vm447_vm2, %v443_v47, %v444_v48 }
 0x117   :  { %727 = vmatpush.bf16.msra.mxu3 %v2773_v36  ;;  %1001 = vmatpush.bf16.msrb.mxu2 %v2994_v14  ;;  %v2954_v36 = vor.u32 %v3731_v29, %v2953_v28  ;;  %v3717_v14 = vld [vmem:[#allocation7 + $0x44] sm:$0xf]  ;;  %v3715_v28 = vld [vmem:[#allocation7 + $0x2c] sm:$0xf0] }
 0x118   :  { %v3713_v29 = vld [vmem:[#allocation7 + $0x24] sm:$0xf] }
 0x119   :  { %v423_v17 = vpop.f32.mrf.mxu2 }
 0x11a   :  { %v436_v23 = vpop.f32.mrf.mxu3  ;;  %v2777_v17 = vor.u32 %v3687_v6, %v2776_v5  ;;  %v2985_v6 = vld [vmem:[#allocation7 + $0xe0] sm:$0xf] }
 0x11b   :  { %728 = vmatpush.bf16.msra.mxu3 %v2757_v46  ;;  %v2986_v9 = vor.u32 %v3739_v7, %v2985_v6  ;;  %v2939_v46 = vld [vmem:[#allocation7 + $0x90] sm:$0xf0] }
 0x11c   :  { %687 = vmatpush.bf16.msrb.mxu0 %v2777_v17  ;;  %v2969_v17 = vld [vmem:[#allocation7 + $0xc0] sm:$0xf] }
 0x120   :  { %688 = vmatpush.bf16.msrb.mxu0 %v2761_v30 }
 0x123   :  { %v408_v60 = vpop.f32.mrf.mxu1 }
 0x124   :  { %v442_v0 = vrot.slane %v408_v60, 7  ;;  %689 = vmatpush.bf16.msrb.mxu0 %v2745_v42  ;;  %v2937_v42 = vld [vmem:[#allocation7 + $0x80] sm:$0xf] }
 0x126   :  { %v446_v8 = vsel %vm445_vm3, %v4162_v57, %v442_v0  ;;  %v2762_v57 = vld [vmem:[#allocation7 + $0x30] sm:$0xf0] }
 0x127   :  { %v450_v13 = vsel %vm449_vm4, %v446_v8, %v448_v63  ;;  %v2765_v31 = vor.u32 %v3681_v22, %v2762_v57  ;;  %v3737_v8 = vld [vmem:[#allocation7 + $0xe4] sm:$0xf]  ;;  %v2970_v22 = vor.u32 %v3735_v19, %v2969_v17  ;;  %v2974_v57 = vor.u32 %v3733_v20, %v2971_v21  ;;  %v2913_v19 = vld [vmem:[#allocation7 + $0x48] sm:$0xf]  ;;  %v3720_v20 = vld [vmem:[#allocation7 + $0x54] sm:$0xf0] }
 0x128   :  { %v452_v16 = vadd.f32 %v450_v13, %v192_v2  ;;  %v2990_v13 = vor.u32 %v3737_v8, %v2987_v10  ;;  %975 = vmatpush.bf16.msra.mxu0 %v2986_v9  ;;  %v488_v9 = vld [vmem:[#allocation2 + $0x1] ss:$8 sm:$0xf] }
 0x129   :  { %701 = vmatpush.bf16.msrb.mxu1 %v2765_v31  ;;  %v3729_v31 = vld [vmem:[#allocation7 + $0xa4] sm:$0xf] }
 0x12a   :  { %v2741_v23 = vmul.f32 -1.442695, %v452_v16  ;;  %v473_v50 = vrot.slane %v452_v16, 3  ;;  %v2995_v16 = vld [vmem:[#allocation7 + $0xf8] sm:$0xf0]  ;;  %v2958_v40 = vor.u32 %v3729_v31, %v2955_v32 }
 0x12b   :  { %v410_v27 = vpop.f32.mrf.mxu1  ;;  %v2998_v18 = vor.u32 %v3738_v15, %v2995_v16 }
 0x12c   :  { %3915 = vpow2.f32 %v2741_v23  ;;  %v2977_v23 = vld [vmem:[#allocation7 + $0xc8] sm:$0xf]  ;;  %v2979_v27 = vld [vmem:[#allocation7 + $0xd8] sm:$0xf0]  ;;  %976 = vmatpush.bf16.msra.mxu0 %v2970_v22  ;;  %v3718_v22 = vld [vmem:[#allocation7 + $0x4c] sm:$0xf] }
 0x12d   :  { %702 = vmatpush.bf16.msrb.mxu1 %v2749_v43  ;;  %1014 = vmatpush.bf16.msrb.mxu3 %v2998_v18  ;;  %v2978_v26 = vor.u32 %v3736_v24, %v2977_v23  ;;  %v2982_v30 = vor.u32 %v3734_v25, %v2979_v27  ;;  %v3727_v43 = vld [vmem:[#allocation7 + $0x8c] sm:$0xf0]  ;;  %v2907_v18 = vld [vmem:[#allocation7 + $0x50] sm:$0xf0]  ;;  %v2889_v25 = vld [vmem:[#allocation7 + $0x20] sm:$0xf]  ;;  %v2914_v27 = vor.u32 %v3720_v20, %v2913_v19 }
 0x12e   :  { %v2890_v39 = vor.u32 %v3715_v28, %v2889_v25  ;;  %v3116_v19 = vld [vmem:[#allocation7 + $0xf0] sm:$0xf0]  ;;  %v3772_v20 = vld [vmem:[#allocation7 + $0xf4] sm:$0xf0] }
 0x12f   :  { %1002 = vmatpush.bf16.msrb.mxu2 %v2978_v26  ;;  %v2910_v26 = vor.u32 %v3717_v14, %v2907_v18  ;;  %v3100_v28 = vld [vmem:[#allocation7 + $0xd0] sm:$0xf0] }
 0x130   :  { %977 = vmatpush.bf16.msra.mxu0 %v2954_v36 }
 0x131   :  { %988 = vmatpush.bf16.msra.mxu1 %v2990_v13  ;;  %1015 = vmatpush.bf16.msrb.mxu3 %v2982_v30  ;;  %v3719_v13 = vld [vmem:[#allocation7 + $0x4c] sm:$0xf0]  ;;  %v2891_v30 = vld [vmem:[#allocation7 + $0x30] sm:$0xf0] }
 0x132   :  { %v3916_v45 = vpop.eup %3915  ;;  %v2906_v24 = vor.u32 %v3719_v13, %v2905_v12 }
 0x133   :  { %v456_v47 = vadd.f32 1.0, %v3916_v45  ;;  %v3725_v45 = vld [vmem:[#allocation7 + $0x84] sm:$0xf]  ;;  %1003 = vmatpush.bf16.msrb.mxu2 %v2962_v41 }
 0x135   :  { %3917 = vrcp.f32 %v456_v47  ;;  %v468_v52 = vand.u32 2147483648, %v456_v47  ;;  %v466_v54 = vand.u32 2147483647, %v456_v47  ;;  %vm462_vm6 = vweird.f32 %v456_v47  ;;  %989 = vmatpush.bf16.msra.mxu1 %v2974_v57  ;;  %1016 = vmatpush.bf16.msrb.mxu3 %v2966_v44  ;;  %v2915_v57 = vld [vmem:[#allocation7 + $0x58] sm:$0xf0] }
 0x136   :  { %3919 = vtanh.f32 %v473_v50  ;;  %v2947_v50 = vld [vmem:[#allocation7 + $0x98] sm:$0xf0]  ;;  %v2918_v32 = vor.u32 %v3718_v22, %v2915_v57  ;;  %v3709_v44 = vld [vmem:[#allocation7 + $0x4] sm:$0xf]  ;;  %v3770_v57 = vld [vmem:[#allocation7 + $0xec] sm:$0xf] }
 0x137   :  { %v469_v56 = vor.u32 1.1754944e-38, %v468_v52  ;;  %vm467_vm8 = vcmp.eq.f32.partialorder %v466_v54, 8.507059e+37  ;;  %v2938_v52 = vor.u32 %v3727_v43, %v2937_v42  ;;  %v2873_v42 = vld [vmem:[#allocation7] sm:$0xf]  ;;  %v3711_v43 = vld [vmem:[#allocation7 + $0xc] sm:$0xf0] }
 0x139   :  { %990 = vmatpush.bf16.msra.mxu1 %v2958_v40  ;;  %978 = vmatpush.bf16.msra.mxu0 %v2938_v52  ;;  %v2894_v40 = vor.u32 %v3713_v29, %v2891_v30 }
 0x13b   :  { %v3918_v48 = vpop.eup %3917 }
 0x13c   :  { %v458_v49 = vmul.f32 %v3918_v48, %v456_v47  ;;  %vm463_vm5 = vweird.f32 %v3918_v48  ;;  %v3920_v62 = vpop.eup %3919  ;;  %v2945_v47 = vld [vmem:[#allocation7 + $0x88] sm:$0xf] }
 0x13d   :  { %vm464_vm7 = vmor %vm462_vm6, %vm463_vm5 }
 0x13e   :  { %v459_v51 = vsub.f32 1.0, %v458_v49  ;;  %v3726_v49 = vld [vmem:[#allocation7 + $0x8c] sm:$0xf] }
 0x140   :  { %v460_v53 = vmul.f32 %v3918_v48, %v459_v51 }
 0x142   :  { %v461_v55 = vadd.f32 %v3918_v48, %v460_v53  ;;  %v2942_v53 = vor.u32 %v3725_v45, %v2939_v46  ;;  %v2902_v45 = vor.u32 %v3714_v37, %v2899_v38  ;;  %v2875_v46 = vld [vmem:[#allocation7 + $0x10] sm:$0xf0]  ;;  %v3763_v37 = vld [vmem:[#allocation7 + $0xac] sm:$0xf0] }
 0x143   :  { %v2878_v52 = vor.u32 %v3709_v44, %v2875_v46  ;;  %v3762_v46 = vld [vmem:[#allocation7 + $0xac] sm:$0xf] }
 0x144   :  { %v465_v58 = vsel %vm464_vm7, %v3918_v48, %v461_v55  ;;  %v3728_v48 = vld [vmem:[#allocation7 + $0x94] sm:$0xf0]  ;;  %v2921_v55 = vld [vmem:[#allocation7 + $0x60] sm:$0xf]  ;;  %991 = vmatpush.bf16.msra.mxu1 %v2942_v53 }
 0x145   :  { %v470_v60 = vsel %vm467_vm8, %v469_v56, %v465_v58  ;;  %v2946_v54 = vor.u32 %v3728_v48, %v2945_v47  ;;  %v3723_v56 = vld [vmem:[#allocation7 + $0x6c] sm:$0xf0]  ;;  %v3721_v58 = vld [vmem:[#allocation7 + $0x64] sm:$0xf]  ;;  %v2881_v47 = vld [vmem:[#allocation7 + $0x8] sm:$0xf] }
 0x146   :  { %v477_v61 = vrot.slane %v470_v60, 1  ;;  %v480_v0 = vmul.f32 %v3920_v62, %v470_v60  ;;  %v483_v2 = vrot.slane %v470_v60, 2  ;;  %v2923_v60 = vld [vmem:[#allocation7 + $0x70] sm:$0xf0]  ;;  %v3724_v62 = vld [vmem:[#allocation7 + $0x74] sm:$0xf0]  ;;  %v2922_v8 = vor.u32 %v3723_v56, %v2921_v55 }
 0x147   :  { %1004 = vmatpush.bf16.msrb.mxu2 %v2946_v54  ;;  %v2926_v10 = vor.u32 %v3721_v58, %v2923_v60  ;;  %v3712_v48 = vld [vmem:[#allocation7 + $0x14] sm:$0xf0] }
 0x148   :  { %v479_v63 = vmul.f32 %v477_v61, %v191_v59  ;;  %v2950_v59 = vor.u32 %v3726_v49, %v2947_v50  ;;  %v2929_v61 = vld [vmem:[#allocation7 + $0x68] sm:$0xf]  ;;  %979 = vmatpush.bf16.msra.mxu0 %v2922_v8  ;;  %v3710_v49 = vld [vmem:[#allocation7 + $0xc] sm:$0xf]  ;;  %v2883_v50 = vld [vmem:[#allocation7 + $0x18] sm:$0xf0]  ;;  %v2882_v53 = vor.u32 %v3712_v48, %v2881_v47 }
 0x149   :  { %v2930_v11 = vor.u32 %v3724_v62, %v2929_v61  ;;  %992 = vmatpush.bf16.msra.mxu1 %v2926_v10  ;;  %v2886_v55 = vor.u32 %v3710_v49, %v2883_v50  ;;  %v3092_v47 = vld [vmem:[#allocation7 + $0xb8] sm:$0xf0]  ;;  %v3066_v50 = vld [vmem:[#allocation7 + $0x80] sm:$0xf] }
 0x14a   :  { %v4177_v1 = vadd.f32 %v480_v0, %v479_v63  ;;  %1017 = vmatpush.bf16.msrb.mxu3 %v2950_v59 }
 0x14b   :  { %1005 = vmatpush.bf16.msrb.mxu2 %v2930_v11 }
 0x14c   :  { %3921 = vtanh.f32 %v4177_v1  ;;  %980 = vmatpush.bf16.msra.mxu0 %v2906_v24  ;;  %v3098_v24 = vld [vmem:[#allocation7 + $0xc0] sm:$0xf] }
 0x14d   :  { %993 = vmatpush.bf16.msra.mxu1 %v2910_v26  ;;  %v3767_v26 = vld [vmem:[#allocation7 + $0xcc] sm:$0xf0] }
 0x14e   :  { %v3099_v29 = vor.u32 %v3767_v26, %v3098_v24  ;;  %v3042_v26 = vld [vmem:[#allocation7 + $0x48] sm:$0xf] }
 0x14f   :  { %1006 = vmatpush.bf16.msrb.mxu2 %v2914_v27  ;;  %v3765_v27 = vld [vmem:[#allocation7 + $0xc4] sm:$0xf] }
 0x150   :  { %981 = vmatpush.bf16.msra.mxu0 %v2890_v39  ;;  %v3103_v30 = vor.u32 %v3765_v27, %v3100_v28  ;;  %v3761_v39 = vld [vmem:[#allocation7 + $0xa4] sm:$0xf]  ;;  %v3752_v27 = vld [vmem:[#allocation7 + $0x54] sm:$0xf0] }
 0x151   :  { %994 = vmatpush.bf16.msra.mxu1 %v2894_v40  ;;  %v3084_v40 = vld [vmem:[#allocation7 + $0xb0] sm:$0xf0] }
 0x152   :  { %v3922_v3 = vpop.eup %3921  ;;  %v3087_v48 = vor.u32 %v3761_v39, %v3084_v40 }
 0x153   :  { %v485_v4 = vmul.f32 %v3922_v3, %v483_v2  ;;  %v3722_v2 = vld [vmem:[#allocation7 + $0x6c] sm:$0xf]  ;;  %v2931_v3 = vld [vmem:[#allocation7 + $0x78] sm:$0xf0] }
 0x154   :  { %v2934_v17 = vor.u32 %v3722_v2, %v2931_v3 }
 0x155   :  { %486 = vst [vmem:[#allocation3] sm:$0x1] %v485_v4  ;;  %v489_v5 = vpack.c.bf16 %v485_v4, %v485_v4  ;;  %995 = vmatpush.bf16.msra.mxu1 %v2878_v52  ;;  %v3095_v52 = vor.u32 %v3762_v46, %v3092_v47  ;;  %v3028_v46 = vld [vmem:[#allocation7 + $0x38] sm:$0xf0] }
 0x156   :  { %1018 = vmatpush.bf16.msrb.mxu3 %v2934_v17  ;;  %v3769_v17 = vld [vmem:[#allocation7 + $0xe4] sm:$0xf] }
 0x157   :  { %690 = vmatmul.bf16.vlgmr.msrb.gmra.mxu0 %v489_v5  ;;  %703 = vmatmul.bf16.vlgmr.msrb.gmra.mxu1 %v489_v5 }
 0x158   :  { %716 = vmatmul.bf16.vlgmr.msra.gmra.mxu2 %v489_v5  ;;  %729 = vmatmul.bf16.vlgmr.msra.gmra.mxu3 %v489_v5 }
 0x15a   :  { %1019 = vmatpush.bf16.msrb.mxu3 %v2918_v32  ;;  %v3768_v32 = vld [vmem:[#allocation7 + $0xd4] sm:$0xf0] }
 0x15e   :  { %1020 = vmatpush.bf16.msrb.mxu3 %v2902_v45  ;;  %v3764_v45 = vld [vmem:[#allocation7 + $0xb4] sm:$0xf0] }
 0x162   :  { %1021 = vmatpush.bf16.msrb.mxu3 %v2886_v55  ;;  %v3074_v55 = vld [vmem:[#allocation7 + $0x88] sm:$0xf] }
 0x1d4   :  { %v691_v34 = vpop.f32.mrf.mxu0  ;;  %v704_v35 = vpop.f32.mrf.mxu1 }
 0x1d5   :  { %v738_v51 = vrot.slane %v704_v35, 7 }
 0x1d7   :  { %v741_v15 = vsel %vm445_vm3, %v691_v34, %v738_v51  ;;  %v3716_v34 = vld [vmem:[#allocation7 + $0x34] sm:$0xf0]  ;;  %v2874_v51 = vor.u32 %v3711_v43, %v2873_v42 }
 0x1d8   :  { %v2898_v41 = vor.u32 %v3716_v34, %v2897_v33  ;;  %v3766_v33 = vld [vmem:[#allocation7 + $0xcc] sm:$0xf] }
 0x1d9   :  { %982 = vmatpush.bf16.msra.mxu0 %v2874_v51  ;;  %v3759_v51 = vld [vmem:[#allocation7 + $0x8c] sm:$0xf0] }
 0x1da   :  { %1007 = vmatpush.bf16.msrb.mxu2 %v2898_v41  ;;  %v3090_v41 = vld [vmem:[#allocation7 + $0xa8] sm:$0xf] }
 0x1db   :  { %v717_v63 = vpop.f32.mrf.mxu2  ;;  %v730_v0 = vpop.f32.mrf.mxu3  ;;  %v3091_v49 = vor.u32 %v3764_v45, %v3090_v41  ;;  %v3026_v41 = vld [vmem:[#allocation7 + $0x28] sm:$0xf]  ;;  %v3746_v45 = vld [vmem:[#allocation7 + $0x2c] sm:$0xf] }
 0x1dc   :  { %v739_v4 = vrot.slane %v717_v63, 6  ;;  %v740_v5 = vrot.slane %v730_v0, 5  ;;  %v693_v6 = vpop.f32.mrf.mxu0  ;;  %v706_v7 = vpop.f32.mrf.mxu1 }
 0x1de   :  { %v742_v16 = vsel %vm447_vm2, %v739_v4, %v740_v5  ;;  %1008 = vmatpush.bf16.msrb.mxu2 %v2882_v53  ;;  %v3757_v53 = vld [vmem:[#allocation7 + $0x84] sm:$0xf] }
 0x1df   :  { %v743_v21 = vsel %vm449_vm4, %v741_v15, %v742_v16  ;;  %v3114_v15 = vld [vmem:[#allocation7 + $0xe0] sm:$0xf]  ;;  %v3771_v16 = vld [vmem:[#allocation7 + $0xec] sm:$0xf0] }
 0x1e0   :  { %v745_v23 = vadd.f32 %v743_v21, %v488_v9  ;;  %v3115_v18 = vor.u32 %v3771_v16, %v3114_v15  ;;  %v3119_v21 = vor.u32 %v3769_v17, %v3116_v19 }
 0x1e2   :  { %v2870_v31 = vmul.f32 -1.442695, %v745_v23  ;;  %v766_v60 = vrot.slane %v745_v23, 3  ;;  %v3124_v23 = vld [vmem:[#allocation7 + $0xf8] sm:$0xf0]  ;;  %1268 = vmatpush.bf16.msrb.mxu0 %v3115_v18  ;;  %1281 = vmatpush.bf16.msrb.mxu1 %v3119_v21 }
 0x1e3   :  { %v719_v35 = vpop.f32.mrf.mxu2  ;;  %v732_v36 = vpop.f32.mrf.mxu3  ;;  %v3127_v25 = vor.u32 %v3770_v57, %v3124_v23  ;;  %v781_v18 = vld [vmem:[#allocation2 + $0x2] ss:$8 sm:$0xf] }
 0x1e4   :  { %3923 = vpow2.f32 %v2870_v31  ;;  %v3106_v31 = vld [vmem:[#allocation7 + $0xc8] sm:$0xf]  ;;  %v3108_v35 = vld [vmem:[#allocation7 + $0xd8] sm:$0xf0]  ;;  %v3082_v36 = vld [vmem:[#allocation7 + $0xa0] sm:$0xf] }
 0x1e5   :  { %1307 = vmatpush.bf16.msra.mxu3 %v3127_v25  ;;  %v3107_v34 = vor.u32 %v3768_v32, %v3106_v31  ;;  %v3111_v38 = vor.u32 %v3766_v33, %v3108_v35  ;;  %v3083_v44 = vor.u32 %v3763_v37, %v3082_v36  ;;  %v3751_v21 = vld [vmem:[#allocation7 + $0x4c] sm:$0xf0]  ;;  %v3036_v25 = vld [vmem:[#allocation7 + $0x50] sm:$0xf0]  ;;  %v3018_v33 = vld [vmem:[#allocation7 + $0x20] sm:$0xf]  ;;  %v3043_v35 = vor.u32 %v3752_v27, %v3042_v26 }
 0x1e6   :  { %1269 = vmatpush.bf16.msrb.mxu0 %v3099_v29  ;;  %1282 = vmatpush.bf16.msrb.mxu1 %v3103_v30  ;;  %v3750_v29 = vld [vmem:[#allocation7 + $0x4c] sm:$0xf]  ;;  %v3044_v30 = vld [vmem:[#allocation7 + $0x58] sm:$0xf0]  ;;  %v3747_v36 = vld [vmem:[#allocation7 + $0x2c] sm:$0xf0] }
 0x1e7   :  { %v3745_v37 = vld [vmem:[#allocation7 + $0x24] sm:$0xf]  ;;  %v3047_v40 = vor.u32 %v3750_v29, %v3044_v30  ;;  %v3019_v47 = vor.u32 %v3747_v36, %v3018_v33  ;;  %v3245_v26 = vld [vmem:[#allocation7 + $0xf0] sm:$0xf0]  ;;  %v3804_v27 = vld [vmem:[#allocation7 + $0xf4] sm:$0xf0] }
 0x1e8   :  { %v3802_v30 = vld [vmem:[#allocation7 + $0xec] sm:$0xf]  ;;  %v3229_v36 = vld [vmem:[#allocation7 + $0xd0] sm:$0xf0] }
 0x1e9   :  { %1308 = vmatpush.bf16.msra.mxu3 %v3111_v38  ;;  %v3020_v38 = vld [vmem:[#allocation7 + $0x30] sm:$0xf0] }
 0x1ea   :  { %v3924_v54 = vpop.eup %3923  ;;  %1270 = vmatpush.bf16.msrb.mxu0 %v3083_v44  ;;  %1283 = vmatpush.bf16.msrb.mxu1 %v3087_v48  ;;  %v3023_v48 = vor.u32 %v3745_v37, %v3020_v38 }
 0x1eb   :  { %v749_v56 = vadd.f32 1.0, %v3924_v54  ;;  %v3068_v54 = vld [vmem:[#allocation7 + $0x90] sm:$0xf0] }
 0x1ed   :  { %3925 = vrcp.f32 %v749_v56  ;;  %v761_v62 = vand.u32 2147483648, %v749_v56  ;;  %v759_v0 = vand.u32 2147483647, %v749_v56  ;;  %vm755_vm10 = vweird.f32 %v749_v56  ;;  %1309 = vmatpush.bf16.msra.mxu3 %v3095_v52  ;;  %v3741_v52 = vld [vmem:[#allocation7 + $0x4] sm:$0xf] }
 0x1ee   :  { %3927 = vtanh.f32 %v766_v60 }
 0x1ef   :  { %v762_v3 = vor.u32 1.1754944e-38, %v761_v62  ;;  %vm760_vm12 = vcmp.eq.f32.partialorder %v759_v0, 8.507059e+37  ;;  %v3071_v62 = vor.u32 %v3757_v53, %v3068_v54  ;;  %v3050_v0 = vld [vmem:[#allocation7 + $0x60] sm:$0xf]  ;;  %v3031_v53 = vor.u32 %v3746_v45, %v3028_v46  ;;  %v3004_v54 = vld [vmem:[#allocation7 + $0x10] sm:$0xf0] }
 0x1f0   :  { %v3795_v45 = vld [vmem:[#allocation7 + $0xac] sm:$0xf0] }
 0x1f1   :  { %1284 = vmatpush.bf16.msrb.mxu1 %v3071_v62 }
 0x1f3   :  { %v3926_v58 = vpop.eup %3925 }
 0x1f4   :  { %v751_v59 = vmul.f32 %v3926_v58, %v749_v56  ;;  %vm756_vm9 = vweird.f32 %v3926_v58  ;;  %v3928_v7 = vpop.eup %3927  ;;  %v3760_v56 = vld [vmem:[#allocation7 + $0x94] sm:$0xf0] }
 0x1f5   :  { %vm757_vm11 = vmor %vm755_vm10, %vm756_vm9 }
 0x1f6   :  { %v752_v61 = vsub.f32 1.0, %v751_v59  ;;  %v3076_v59 = vld [vmem:[#allocation7 + $0x98] sm:$0xf0] }
 0x1f8   :  { %v753_v63 = vmul.f32 %v3926_v58, %v752_v61  ;;  %v3067_v61 = vor.u32 %v3759_v51, %v3066_v50  ;;  %v3002_v50 = vld [vmem:[#allocation7] sm:$0xf]  ;;  %v3743_v51 = vld [vmem:[#allocation7 + $0xc] sm:$0xf0] }
 0x1fa   :  { %v754_v2 = vadd.f32 %v3926_v58, %v753_v63  ;;  %v3075_v63 = vor.u32 %v3760_v56, %v3074_v55  ;;  %1271 = vmatpush.bf16.msrb.mxu0 %v3067_v61  ;;  %v3010_v55 = vld [vmem:[#allocation7 + $0x8] sm:$0xf]  ;;  %v3744_v56 = vld [vmem:[#allocation7 + $0x14] sm:$0xf0]  ;;  %v3007_v61 = vor.u32 %v3741_v52, %v3004_v54  ;;  %v3794_v54 = vld [vmem:[#allocation7 + $0xac] sm:$0xf] }
 0x1fb   :  { %v3011_v62 = vor.u32 %v3744_v56, %v3010_v55  ;;  %v3221_v55 = vld [vmem:[#allocation7 + $0xb8] sm:$0xf0] }
 0x1fc   :  { %v758_v4 = vsel %vm757_vm11, %v3926_v58, %v754_v2  ;;  %v3758_v58 = vld [vmem:[#allocation7 + $0x8c] sm:$0xf]  ;;  %v3755_v2 = vld [vmem:[#allocation7 + $0x6c] sm:$0xf0] }
 0x1fd   :  { %v763_v5 = vsel %vm760_vm12, %v762_v3, %v758_v4  ;;  %v3753_v3 = vld [vmem:[#allocation7 + $0x64] sm:$0xf]  ;;  %v3079_v4 = vor.u32 %v3758_v58, %v3076_v59  ;;  %v3051_v17 = vor.u32 %v3755_v2, %v3050_v0  ;;  %v3742_v58 = vld [vmem:[#allocation7 + $0xc] sm:$0xf]  ;;  %v3012_v59 = vld [vmem:[#allocation7 + $0x18] sm:$0xf0] }
 0x1fe   :  { %v770_v6 = vrot.slane %v763_v5, 1  ;;  %v773_v9 = vmul.f32 %v3928_v7, %v763_v5  ;;  %v776_v11 = vrot.slane %v763_v5, 2  ;;  %v3052_v5 = vld [vmem:[#allocation7 + $0x70] sm:$0xf0]  ;;  %v3756_v7 = vld [vmem:[#allocation7 + $0x74] sm:$0xf0]  ;;  %v3015_v0 = vor.u32 %v3742_v58, %v3012_v59 }
 0x1ff   :  { %v3055_v19 = vor.u32 %v3753_v3, %v3052_v5  ;;  %1310 = vmatpush.bf16.msra.mxu3 %v3079_v4  ;;  %1272 = vmatpush.bf16.msrb.mxu0 %v3051_v17  ;;  %v3195_v59 = vld [vmem:[#allocation7 + $0x80] sm:$0xf] }
 0x200   :  { %v772_v8 = vmul.f32 %v770_v6, %v4177_v1  ;;  %v3122_v1 = vld [vmem:[#allocation7 + $0xe8] sm:$0xf] }
 0x201   :  { %v3123_v22 = vor.u32 %v3772_v20, %v3122_v1  ;;  %v3058_v6 = vld [vmem:[#allocation7 + $0x68] sm:$0xf]  ;;  %v3034_v20 = vld [vmem:[#allocation7 + $0x40] sm:$0xf]  ;;  %1285 = vmatpush.bf16.msrb.mxu1 %v3055_v19 }
 0x202   :  { %v4184_v10 = vadd.f32 %v773_v9, %v772_v8  ;;  %v3059_v1 = vor.u32 %v3756_v7, %v3058_v6  ;;  %v3035_v32 = vor.u32 %v3751_v21, %v3034_v20 }
 0x203   :  { %1294 = vmatpush.bf16.msra.mxu2 %v3123_v22  ;;  %v3749_v22 = vld [vmem:[#allocation7 + $0x44] sm:$0xf] }
 0x204   :  { %3929 = vtanh.f32 %v4184_v10  ;;  %1273 = vmatpush.bf16.msrb.mxu0 %v3035_v32  ;;  %v3227_v32 = vld [vmem:[#allocation7 + $0xc0] sm:$0xf] }
 0x207   :  { %1295 = vmatpush.bf16.msra.mxu2 %v3107_v34  ;;  %v3039_v34 = vor.u32 %v3749_v22, %v3036_v25 }
 0x208   :  { %1274 = vmatpush.bf16.msrb.mxu0 %v3019_v47  ;;  %v3793_v47 = vld [vmem:[#allocation7 + $0xa4] sm:$0xf] }
 0x209   :  { %1286 = vmatpush.bf16.msrb.mxu1 %v3039_v34  ;;  %v3799_v34 = vld [vmem:[#allocation7 + $0xcc] sm:$0xf0] }
 0x20a   :  { %v3930_v12 = vpop.eup %3929  ;;  %v3228_v37 = vor.u32 %v3799_v34, %v3227_v32  ;;  %v3171_v34 = vld [vmem:[#allocation7 + $0x48] sm:$0xf] }
 0x20b   :  { %v778_v13 = vmul.f32 %v3930_v12, %v776_v11  ;;  %1296 = vmatpush.bf16.msra.mxu2 %v3091_v49  ;;  %v3754_v11 = vld [vmem:[#allocation7 + $0x6c] sm:$0xf]  ;;  %v3060_v12 = vld [vmem:[#allocation7 + $0x78] sm:$0xf0] }
 0x20c   :  { %v3063_v24 = vor.u32 %v3754_v11, %v3060_v12 }
 0x20d   :  { %779 = vst [vmem:[#allocation3 + $0x1] sm:$0x1] %v778_v13  ;;  %v782_v14 = vpack.c.bf16 %v778_v13, %v778_v13  ;;  %1287 = vmatpush.bf16.msrb.mxu1 %v3023_v48  ;;  %v3213_v48 = vld [vmem:[#allocation7 + $0xb0] sm:$0xf0] }
 0x20e   :  { %1311 = vmatpush.bf16.msra.mxu3 %v3063_v24  ;;  %v3801_v24 = vld [vmem:[#allocation7 + $0xe4] sm:$0xf]  ;;  %v3216_v56 = vor.u32 %v3793_v47, %v3213_v48 }
 0x20f   :  { %983 = vmatmul.bf16.vlgmr.msra.gmra.mxu0 %v782_v14  ;;  %996 = vmatmul.bf16.vlgmr.msra.gmra.mxu1 %v782_v14 }
 0x210   :  { %1009 = vmatmul.bf16.vlgmr.msrb.gmra.mxu2 %v782_v14  ;;  %1022 = vmatmul.bf16.vlgmr.msrb.gmra.mxu3 %v782_v14 }
 0x211   :  { %1297 = vmatpush.bf16.msra.mxu2 %v3075_v63  ;;  %1288 = vmatpush.bf16.msrb.mxu1 %v3007_v61  ;;  %v3224_v61 = vor.u32 %v3794_v54, %v3221_v55  ;;  %v3157_v54 = vld [vmem:[#allocation7 + $0x38] sm:$0xf0] }
 0x212   :  { %1312 = vmatpush.bf16.msra.mxu3 %v3047_v40  ;;  %v3800_v40 = vld [vmem:[#allocation7 + $0xd4] sm:$0xf0] }
 0x215   :  { %1298 = vmatpush.bf16.msra.mxu2 %v3059_v1 }
 0x216   :  { %1313 = vmatpush.bf16.msra.mxu3 %v3031_v53  ;;  %v3796_v53 = vld [vmem:[#allocation7 + $0xb4] sm:$0xf0] }
 0x219   :  { %1299 = vmatpush.bf16.msra.mxu2 %v3043_v35  ;;  %v3797_v35 = vld [vmem:[#allocation7 + $0xc4] sm:$0xf] }
 0x21a   :  { %1314 = vmatpush.bf16.msra.mxu3 %v3015_v0  ;;  %v3232_v38 = vor.u32 %v3797_v35, %v3229_v36  ;;  %v3203_v0 = vld [vmem:[#allocation7 + $0x88] sm:$0xf]  ;;  %v3784_v35 = vld [vmem:[#allocation7 + $0x54] sm:$0xf0] }
 0x28c   :  { %v984_v42 = vpop.f32.mrf.mxu0  ;;  %v997_v43 = vpop.f32.mrf.mxu1 }
 0x28d   :  { %v1031_v60 = vrot.slane %v997_v43, 7 }
 0x28f   :  { %v1034_v57 = vsel %vm445_vm3, %v984_v42, %v1031_v60  ;;  %v3748_v42 = vld [vmem:[#allocation7 + $0x34] sm:$0xf0]  ;;  %v3003_v60 = vor.u32 %v3743_v51, %v3002_v50 }
 0x290   :  { %v3027_v49 = vor.u32 %v3748_v42, %v3026_v41  ;;  %v3798_v41 = vld [vmem:[#allocation7 + $0xcc] sm:$0xf] }
 0x291   :  { %1275 = vmatpush.bf16.msrb.mxu0 %v3003_v60  ;;  %v3791_v60 = vld [vmem:[#allocation7 + $0x8c] sm:$0xf0] }
 0x292   :  { %1300 = vmatpush.bf16.msra.mxu2 %v3027_v49  ;;  %v3219_v49 = vld [vmem:[#allocation7 + $0xa8] sm:$0xf] }
 0x293   :  { %v1010_v8 = vpop.f32.mrf.mxu2  ;;  %v1023_v9 = vpop.f32.mrf.mxu3  ;;  %v3220_v58 = vor.u32 %v3796_v53, %v3219_v49  ;;  %v3155_v49 = vld [vmem:[#allocation7 + $0x28] sm:$0xf]  ;;  %v3778_v53 = vld [vmem:[#allocation7 + $0x2c] sm:$0xf] }
 0x294   :  { %v1032_v13 = vrot.slane %v1010_v8, 6  ;;  %v1033_v14 = vrot.slane %v1023_v9, 5  ;;  %v986_v15 = vpop.f32.mrf.mxu0  ;;  %v999_v16 = vpop.f32.mrf.mxu1 }
 0x296   :  { %v1035_v23 = vsel %vm447_vm2, %v1032_v13, %v1033_v14  ;;  %1301 = vmatpush.bf16.msra.mxu2 %v3011_v62  ;;  %v3789_v62 = vld [vmem:[#allocation7 + $0x84] sm:$0xf] }
 0x297   :  { %v1036_v28 = vsel %vm449_vm4, %v1034_v57, %v1035_v23  ;;  %v3243_v57 = vld [vmem:[#allocation7 + $0xe0] sm:$0xf]  ;;  %v3803_v23 = vld [vmem:[#allocation7 + $0xec] sm:$0xf0] }
 0x298   :  { %v1038_v31 = vadd.f32 %v1036_v28, %v781_v18  ;;  %v3244_v25 = vor.u32 %v3803_v23, %v3243_v57  ;;  %v3248_v28 = vor.u32 %v3801_v24, %v3245_v26 }
 0x29a   :  { %v2999_v39 = vmul.f32 -1.442695, %v1038_v31  ;;  %v1059_v5 = vrot.slane %v1038_v31, 3  ;;  %v3253_v31 = vld [vmem:[#allocation7 + $0xf8] sm:$0xf0]  ;;  %1561 = vmatpush.bf16.msra.mxu0 %v3244_v25  ;;  %1574 = vmatpush.bf16.msra.mxu1 %v3248_v28 }
 0x29b   :  { %v1012_v43 = vpop.f32.mrf.mxu2  ;;  %v1025_v44 = vpop.f32.mrf.mxu3  ;;  %v3256_v33 = vor.u32 %v3802_v30, %v3253_v31  ;;  %v1074_v25 = vld [vmem:[#allocation2 + $0x3] ss:$8 sm:$0xf] }
 0x29c   :  { %3931 = vpow2.f32 %v2999_v39  ;;  %v3235_v39 = vld [vmem:[#allocation7 + $0xc8] sm:$0xf]  ;;  %v3237_v43 = vld [vmem:[#allocation7 + $0xd8] sm:$0xf0]  ;;  %v3211_v44 = vld [vmem:[#allocation7 + $0xa0] sm:$0xf] }
 0x29d   :  { %1600 = vmatpush.bf16.msrb.mxu3 %v3256_v33  ;;  %v3236_v42 = vor.u32 %v3800_v40, %v3235_v39  ;;  %v3240_v46 = vor.u32 %v3798_v41, %v3237_v43  ;;  %v3212_v52 = vor.u32 %v3795_v45, %v3211_v44  ;;  %v3783_v28 = vld [vmem:[#allocation7 + $0x4c] sm:$0xf0]  ;;  %v3165_v33 = vld [vmem:[#allocation7 + $0x50] sm:$0xf0]  ;;  %v3147_v41 = vld [vmem:[#allocation7 + $0x20] sm:$0xf]  ;;  %v3172_v43 = vor.u32 %v3784_v35, %v3171_v34 }
 0x29e   :  { %1562 = vmatpush.bf16.msra.mxu0 %v3228_v37  ;;  %1575 = vmatpush.bf16.msra.mxu1 %v3232_v38  ;;  %v3782_v37 = vld [vmem:[#allocation7 + $0x4c] sm:$0xf]  ;;  %v3173_v38 = vld [vmem:[#allocation7 + $0x58] sm:$0xf0]  ;;  %v3779_v44 = vld [vmem:[#allocation7 + $0x2c] sm:$0xf0] }
 0x29f   :  { %v3777_v45 = vld [vmem:[#allocation7 + $0x24] sm:$0xf]  ;;  %v3176_v48 = vor.u32 %v3782_v37, %v3173_v38  ;;  %v3148_v55 = vor.u32 %v3779_v44, %v3147_v41  ;;  %v3374_v34 = vld [vmem:[#allocation7 + $0xf0] sm:$0xf0]  ;;  %v3836_v35 = vld [vmem:[#allocation7 + $0xf4] sm:$0xf0] }
 0x2a0   :  { %v3834_v38 = vld [vmem:[#allocation7 + $0xec] sm:$0xf]  ;;  %v3358_v44 = vld [vmem:[#allocation7 + $0xd0] sm:$0xf0] }
 0x2a1   :  { %1601 = vmatpush.bf16.msrb.mxu3 %v3240_v46  ;;  %v3149_v46 = vld [vmem:[#allocation7 + $0x30] sm:$0xf0] }
 0x2a2   :  { %v3932_v63 = vpop.eup %3931  ;;  %1563 = vmatpush.bf16.msra.mxu0 %v3212_v52  ;;  %1576 = vmatpush.bf16.msra.mxu1 %v3216_v56  ;;  %v3152_v56 = vor.u32 %v3777_v45, %v3149_v46 }
 0x2a3   :  { %v1042_v2 = vadd.f32 1.0, %v3932_v63  ;;  %v3197_v63 = vld [vmem:[#allocation7 + $0x90] sm:$0xf0] }
 0x2a5   :  { %3933 = vrcp.f32 %v1042_v2  ;;  %v1054_v7 = vand.u32 2147483648, %v1042_v2  ;;  %v1052_v9 = vand.u32 2147483647, %v1042_v2  ;;  %vm1048_vm14 = vweird.f32 %v1042_v2  ;;  %1602 = vmatpush.bf16.msrb.mxu3 %v3224_v61  ;;  %v3773_v61 = vld [vmem:[#allocation7 + $0x4] sm:$0xf] }
 0x2a6   :  { %3935 = vtanh.f32 %v1059_v5 }
 0x2a7   :  { %v1055_v12 = vor.u32 1.1754944e-38, %v1054_v7  ;;  %vm1053_vm0 = vcmp.eq.f32.partialorder %v1052_v9, 8.507059e+37  ;;  %v3200_v7 = vor.u32 %v3789_v62, %v3197_v63  ;;  %v3179_v9 = vld [vmem:[#allocation7 + $0x60] sm:$0xf]  ;;  %v3160_v62 = vor.u32 %v3778_v53, %v3157_v54  ;;  %v3133_v63 = vld [vmem:[#allocation7 + $0x10] sm:$0xf0] }
 0x2a8   :  { %v3827_v53 = vld [vmem:[#allocation7 + $0xac] sm:$0xf0] }
 0x2a9   :  { %1577 = vmatpush.bf16.msra.mxu1 %v3200_v7 }
 0x2ab   :  { %v3934_v3 = vpop.eup %3933 }
 0x2ac   :  { %v1044_v4 = vmul.f32 %v3934_v3, %v1042_v2  ;;  %vm1049_vm13 = vweird.f32 %v3934_v3  ;;  %v3936_v16 = vpop.eup %3935  ;;  %v3792_v2 = vld [vmem:[#allocation7 + $0x94] sm:$0xf0] }
 0x2ad   :  { %vm1050_vm15 = vmor %vm1048_vm14, %vm1049_vm13 }
 0x2ae   :  { %v1045_v6 = vsub.f32 1.0, %v1044_v4  ;;  %v3205_v4 = vld [vmem:[#allocation7 + $0x98] sm:$0xf0] }
 0x2b0   :  { %v1046_v8 = vmul.f32 %v3934_v3, %v1045_v6  ;;  %v3196_v6 = vor.u32 %v3791_v60, %v3195_v59  ;;  %v3131_v59 = vld [vmem:[#allocation7] sm:$0xf]  ;;  %v3775_v60 = vld [vmem:[#allocation7 + $0xc] sm:$0xf0] }
 0x2b2   :  { %v1047_v11 = vadd.f32 %v3934_v3, %v1046_v8  ;;  %v3204_v8 = vor.u32 %v3792_v2, %v3203_v0  ;;  %1564 = vmatpush.bf16.msra.mxu0 %v3196_v6  ;;  %v3139_v0 = vld [vmem:[#allocation7 + $0x8] sm:$0xf]  ;;  %v3776_v2 = vld [vmem:[#allocation7 + $0x14] sm:$0xf0]  ;;  %v3136_v6 = vor.u32 %v3773_v61, %v3133_v63  ;;  %v3826_v63 = vld [vmem:[#allocation7 + $0xac] sm:$0xf] }
 0x2b3   :  { %v3140_v7 = vor.u32 %v3776_v2, %v3139_v0  ;;  %v3350_v0 = vld [vmem:[#allocation7 + $0xb8] sm:$0xf0] }
 0x2b4   :  { %v1051_v13 = vsel %vm1050_vm15, %v3934_v3, %v1047_v11  ;;  %v3790_v3 = vld [vmem:[#allocation7 + $0x8c] sm:$0xf]  ;;  %v3787_v11 = vld [vmem:[#allocation7 + $0x6c] sm:$0xf0] }
 0x2b5   :  { %v1056_v14 = vsel %vm1053_vm0, %v1055_v12, %v1051_v13  ;;  %v3785_v12 = vld [vmem:[#allocation7 + $0x64] sm:$0xf]  ;;  %v3208_v13 = vor.u32 %v3790_v3, %v3205_v4  ;;  %v3180_v24 = vor.u32 %v3787_v11, %v3179_v9  ;;  %v3774_v3 = vld [vmem:[#allocation7 + $0xc] sm:$0xf]  ;;  %v3141_v4 = vld [vmem:[#allocation7 + $0x18] sm:$0xf0] }
 0x2b6   :  { %v1063_v15 = vrot.slane %v1056_v14, 1  ;;  %v1066_v18 = vmul.f32 %v3936_v16, %v1056_v14  ;;  %v1069_v1 = vrot.slane %v1056_v14, 2  ;;  %v3181_v14 = vld [vmem:[#allocation7 + $0x70] sm:$0xf0]  ;;  %v3788_v16 = vld [vmem:[#allocation7 + $0x74] sm:$0xf0]  ;;  %v3144_v9 = vor.u32 %v3774_v3, %v3141_v4 }
 0x2b7   :  { %v3184_v26 = vor.u32 %v3785_v12, %v3181_v14  ;;  %1603 = vmatpush.bf16.msrb.mxu3 %v3208_v13  ;;  %1565 = vmatpush.bf16.msra.mxu0 %v3180_v24  ;;  %v3324_v4 = vld [vmem:[#allocation7 + $0x80] sm:$0xf] }
 0x2b8   :  { %v1065_v17 = vmul.f32 %v1063_v15, %v4184_v10  ;;  %v3251_v10 = vld [vmem:[#allocation7 + $0xe8] sm:$0xf] }
 0x2b9   :  { %v3252_v29 = vor.u32 %v3804_v27, %v3251_v10  ;;  %v3187_v15 = vld [vmem:[#allocation7 + $0x68] sm:$0xf]  ;;  %v3163_v27 = vld [vmem:[#allocation7 + $0x40] sm:$0xf]  ;;  %1578 = vmatpush.bf16.msra.mxu1 %v3184_v26 }
 0x2ba   :  { %v4191_v19 = vadd.f32 %v1066_v18, %v1065_v17  ;;  %v3188_v10 = vor.u32 %v3788_v16, %v3187_v15  ;;  %v3164_v40 = vor.u32 %v3783_v28, %v3163_v27 }
 0x2bb   :  { %1587 = vmatpush.bf16.msrb.mxu2 %v3252_v29  ;;  %v3781_v29 = vld [vmem:[#allocation7 + $0x44] sm:$0xf] }
 0x2bc   :  { %3937 = vtanh.f32 %v4191_v19  ;;  %1566 = vmatpush.bf16.msra.mxu0 %v3164_v40  ;;  %v3356_v40 = vld [vmem:[#allocation7 + $0xc0] sm:$0xf] }
 0x2bf   :  { %1588 = vmatpush.bf16.msrb.mxu2 %v3236_v42  ;;  %v3168_v42 = vor.u32 %v3781_v29, %v3165_v33 }
 0x2c0   :  { %1567 = vmatpush.bf16.msra.mxu0 %v3148_v55  ;;  %v3825_v55 = vld [vmem:[#allocation7 + $0xa4] sm:$0xf] }
 0x2c1   :  { %1579 = vmatpush.bf16.msra.mxu1 %v3168_v42  ;;  %v3831_v42 = vld [vmem:[#allocation7 + $0xcc] sm:$0xf0] }
 0x2c2   :  { %v3938_v20 = vpop.eup %3937  ;;  %v3357_v45 = vor.u32 %v3831_v42, %v3356_v40  ;;  %v3300_v42 = vld [vmem:[#allocation7 + $0x48] sm:$0xf] }
 0x2c3   :  { %v1071_v21 = vmul.f32 %v3938_v20, %v1069_v1  ;;  %1589 = vmatpush.bf16.msrb.mxu2 %v3220_v58  ;;  %v3786_v1 = vld [vmem:[#allocation7 + $0x6c] sm:$0xf]  ;;  %v3189_v20 = vld [vmem:[#allocation7 + $0x78] sm:$0xf0] }
 0x2c4   :  { %v3192_v32 = vor.u32 %v3786_v1, %v3189_v20 }
 0x2c5   :  { %1072 = vst [vmem:[#allocation3 + $0x2] sm:$0x1] %v1071_v21  ;;  %v1075_v22 = vpack.c.bf16 %v1071_v21, %v1071_v21  ;;  %1580 = vmatpush.bf16.msra.mxu1 %v3152_v56  ;;  %v3342_v56 = vld [vmem:[#allocation7 + $0xb0] sm:$0xf0] }
 0x2c6   :  { %1604 = vmatpush.bf16.msrb.mxu3 %v3192_v32  ;;  %v3833_v32 = vld [vmem:[#allocation7 + $0xe4] sm:$0xf]  ;;  %v3345_v2 = vor.u32 %v3825_v55, %v3342_v56 }
 0x2c7   :  { %1276 = vmatmul.bf16.vlgmr.msrb.gmra.mxu0 %v1075_v22  ;;  %1289 = vmatmul.bf16.vlgmr.msrb.gmra.mxu1 %v1075_v22 }
 0x2c8   :  { %1302 = vmatmul.bf16.vlgmr.msra.gmra.mxu2 %v1075_v22  ;;  %1315 = vmatmul.bf16.vlgmr.msra.gmra.mxu3 %v1075_v22 }
 0x2c9   :  { %1590 = vmatpush.bf16.msrb.mxu2 %v3204_v8  ;;  %1581 = vmatpush.bf16.msra.mxu1 %v3136_v6  ;;  %v3353_v6 = vor.u32 %v3826_v63, %v3350_v0  ;;  %v3286_v63 = vld [vmem:[#allocation7 + $0x38] sm:$0xf0] }
 0x2ca   :  { %1605 = vmatpush.bf16.msrb.mxu3 %v3176_v48  ;;  %v3832_v48 = vld [vmem:[#allocation7 + $0xd4] sm:$0xf0] }
 0x2cd   :  { %1591 = vmatpush.bf16.msrb.mxu2 %v3188_v10 }
 0x2ce   :  { %1606 = vmatpush.bf16.msrb.mxu3 %v3160_v62  ;;  %v3828_v62 = vld [vmem:[#allocation7 + $0xb4] sm:$0xf0] }
 0x2d1   :  { %1592 = vmatpush.bf16.msrb.mxu2 %v3172_v43  ;;  %v3829_v43 = vld [vmem:[#allocation7 + $0xc4] sm:$0xf] }
 0x2d2   :  { %1607 = vmatpush.bf16.msrb.mxu3 %v3144_v9  ;;  %v3361_v46 = vor.u32 %v3829_v43, %v3358_v44  ;;  %v3332_v9 = vld [vmem:[#allocation7 + $0x88] sm:$0xf]  ;;  %v3816_v43 = vld [vmem:[#allocation7 + $0x54] sm:$0xf0] }
 0x344   :  { %v1277_v50 = vpop.f32.mrf.mxu0  ;;  %v1290_v51 = vpop.f32.mrf.mxu1 }
 0x345   :  { %v1324_v5 = vrot.slane %v1290_v51, 7 }
 0x347   :  { %v1327_v30 = vsel %vm445_vm3, %v1277_v50, %v1324_v5  ;;  %v3780_v50 = vld [vmem:[#allocation7 + $0x34] sm:$0xf0]  ;;  %v3132_v5 = vor.u32 %v3775_v60, %v3131_v59 }
 0x348   :  { %v3156_v58 = vor.u32 %v3780_v50, %v3155_v49  ;;  %v3830_v49 = vld [vmem:[#allocation7 + $0xcc] sm:$0xf] }
 0x349   :  { %1568 = vmatpush.bf16.msra.mxu0 %v3132_v5  ;;  %v3823_v5 = vld [vmem:[#allocation7 + $0x8c] sm:$0xf0] }
 0x34a   :  { %1593 = vmatpush.bf16.msrb.mxu2 %v3156_v58  ;;  %v3348_v58 = vld [vmem:[#allocation7 + $0xa8] sm:$0xf] }
 0x34b   :  { %v1303_v17 = vpop.f32.mrf.mxu2  ;;  %v1316_v18 = vpop.f32.mrf.mxu3  ;;  %v3349_v3 = vor.u32 %v3828_v62, %v3348_v58  ;;  %v3284_v58 = vld [vmem:[#allocation7 + $0x28] sm:$0xf]  ;;  %v3810_v62 = vld [vmem:[#allocation7 + $0x2c] sm:$0xf] }
 0x34c   :  { %v1325_v21 = vrot.slane %v1303_v17, 6  ;;  %v1326_v22 = vrot.slane %v1316_v18, 5  ;;  %v1279_v57 = vpop.f32.mrf.mxu0  ;;  %v1292_v23 = vpop.f32.mrf.mxu1 }
 0x34e   :  { %v1328_v31 = vsel %vm447_vm2, %v1325_v21, %v1326_v22  ;;  %1594 = vmatpush.bf16.msrb.mxu2 %v3140_v7  ;;  %v3821_v7 = vld [vmem:[#allocation7 + $0x84] sm:$0xf] }
 0x34f   :  { %v1329_v36 = vsel %vm449_vm4, %v1327_v30, %v1328_v31  ;;  %v3372_v30 = vld [vmem:[#allocation7 + $0xe0] sm:$0xf]  ;;  %v3835_v31 = vld [vmem:[#allocation7 + $0xec] sm:$0xf0] }
 0x350   :  { %v1331_v39 = vadd.f32 %v1329_v36, %v1074_v25  ;;  %v3373_v33 = vor.u32 %v3835_v31, %v3372_v30  ;;  %v3377_v36 = vor.u32 %v3833_v32, %v3374_v34 }
 0x352   :  { %v3128_v47 = vmul.f32 -1.442695, %v1331_v39  ;;  %v1352_v14 = vrot.slane %v1331_v39, 3  ;;  %v3382_v39 = vld [vmem:[#allocation7 + $0xf8] sm:$0xf0]  ;;  %1854 = vmatpush.bf16.msrb.mxu0 %v3373_v33  ;;  %1867 = vmatpush.bf16.msrb.mxu1 %v3377_v36 }
 0x353   :  { %v1305_v51 = vpop.f32.mrf.mxu2  ;;  %v1318_v52 = vpop.f32.mrf.mxu3  ;;  %v3385_v41 = vor.u32 %v3834_v38, %v3382_v39  ;;  %v1367_v33 = vld [vmem:[#allocation2 + $0x4] ss:$8 sm:$0xf]  ;;  %v3815_v36 = vld [vmem:[#allocation7 + $0x4c] sm:$0xf0] }
 0x354   :  { %3939 = vpow2.f32 %v3128_v47  ;;  %v3364_v47 = vld [vmem:[#allocation7 + $0xc8] sm:$0xf]  ;;  %v3366_v51 = vld [vmem:[#allocation7 + $0xd8] sm:$0xf0]  ;;  %v3340_v52 = vld [vmem:[#allocation7 + $0xa0] sm:$0xf] }
 0x355   :  { %1893 = vmatpush.bf16.msra.mxu3 %v3385_v41  ;;  %v3365_v50 = vor.u32 %v3832_v48, %v3364_v47  ;;  %v3369_v54 = vor.u32 %v3830_v49, %v3366_v51  ;;  %v3341_v61 = vor.u32 %v3827_v53, %v3340_v52  ;;  %v3294_v41 = vld [vmem:[#allocation7 + $0x50] sm:$0xf0]  ;;  %v3276_v49 = vld [vmem:[#allocation7 + $0x20] sm:$0xf]  ;;  %v3301_v51 = vor.u32 %v3816_v43, %v3300_v42  ;;  %v3811_v52 = vld [vmem:[#allocation7 + $0x2c] sm:$0xf0] }
 0x356   :  { %1855 = vmatpush.bf16.msrb.mxu0 %v3357_v45  ;;  %1868 = vmatpush.bf16.msrb.mxu1 %v3361_v46  ;;  %v3814_v45 = vld [vmem:[#allocation7 + $0x4c] sm:$0xf]  ;;  %v3302_v46 = vld [vmem:[#allocation7 + $0x58] sm:$0xf0]  ;;  %v3809_v53 = vld [vmem:[#allocation7 + $0x24] sm:$0xf]  ;;  %v3277_v0 = vor.u32 %v3811_v52, %v3276_v49 }
 0x357   :  { %v3305_v56 = vor.u32 %v3814_v45, %v3302_v46  ;;  %v3503_v42 = vld [vmem:[#allocation7 + $0xf0] sm:$0xf0]  ;;  %v3868_v43 = vld [vmem:[#allocation7 + $0xf4] sm:$0xf0]  ;;  %v3866_v46 = vld [vmem:[#allocation7 + $0xec] sm:$0xf] }
 0x358   :  { %v3487_v52 = vld [vmem:[#allocation7 + $0xd0] sm:$0xf0] }
 0x359   :  { %1894 = vmatpush.bf16.msra.mxu3 %v3369_v54  ;;  %v3278_v54 = vld [vmem:[#allocation7 + $0x30] sm:$0xf0] }
 0x35a   :  { %v3940_v8 = vpop.eup %3939  ;;  %1856 = vmatpush.bf16.msrb.mxu0 %v3341_v61  ;;  %1869 = vmatpush.bf16.msrb.mxu1 %v3345_v2  ;;  %v3281_v2 = vor.u32 %v3809_v53, %v3278_v54 }
 0x35b   :  { %v1335_v11 = vadd.f32 1.0, %v3940_v8  ;;  %v3326_v8 = vld [vmem:[#allocation7 + $0x90] sm:$0xf0] }
 0x35d   :  { %3941 = vrcp.f32 %v1335_v11  ;;  %v1347_v16 = vand.u32 2147483648, %v1335_v11  ;;  %v1345_v18 = vand.u32 2147483647, %v1335_v11  ;;  %vm1341_vm5 = vweird.f32 %v1335_v11  ;;  %1895 = vmatpush.bf16.msra.mxu3 %v3353_v6  ;;  %v3805_v6 = vld [vmem:[#allocation7 + $0x4] sm:$0xf] }
 0x35e   :  { %3943 = vtanh.f32 %v1352_v14 }
 0x35f   :  { %v1348_v20 = vor.u32 1.1754944e-38, %v1347_v16  ;;  %vm1346_vm7 = vcmp.eq.f32.partialorder %v1345_v18, 8.507059e+37  ;;  %v3329_v16 = vor.u32 %v3821_v7, %v3326_v8  ;;  %v3308_v18 = vld [vmem:[#allocation7 + $0x60] sm:$0xf]  ;;  %v3289_v7 = vor.u32 %v3810_v62, %v3286_v63  ;;  %v3262_v8 = vld [vmem:[#allocation7 + $0x10] sm:$0xf0] }
 0x360   :  { %v3859_v62 = vld [vmem:[#allocation7 + $0xac] sm:$0xf0] }
 0x361   :  { %1870 = vmatpush.bf16.msrb.mxu1 %v3329_v16 }
 0x363   :  { %v3942_v12 = vpop.eup %3941 }
 0x364   :  { %v1337_v13 = vmul.f32 %v3942_v12, %v1335_v11  ;;  %vm1342_vm1 = vweird.f32 %v3942_v12  ;;  %v3944_v23 = vpop.eup %3943  ;;  %v3824_v11 = vld [vmem:[#allocation7 + $0x94] sm:$0xf0] }
 0x365   :  { %vm1343_vm6 = vmor %vm1341_vm5, %vm1342_vm1 }
 0x366   :  { %v1338_v15 = vsub.f32 1.0, %v1337_v13  ;;  %v3334_v13 = vld [vmem:[#allocation7 + $0x98] sm:$0xf0] }
 0x368   :  { %v1339_v17 = vmul.f32 %v3942_v12, %v1338_v15  ;;  %v3325_v15 = vor.u32 %v3823_v5, %v3324_v4  ;;  %v3260_v4 = vld [vmem:[#allocation7] sm:$0xf]  ;;  %v3807_v5 = vld [vmem:[#allocation7 + $0xc] sm:$0xf0] }
 0x36a   :  { %v1340_v1 = vadd.f32 %v3942_v12, %v1339_v17  ;;  %v3333_v17 = vor.u32 %v3824_v11, %v3332_v9  ;;  %1857 = vmatpush.bf16.msrb.mxu0 %v3325_v15  ;;  %v3268_v9 = vld [vmem:[#allocation7 + $0x8] sm:$0xf]  ;;  %v3808_v11 = vld [vmem:[#allocation7 + $0x14] sm:$0xf0]  ;;  %v3265_v15 = vor.u32 %v3805_v6, %v3262_v8  ;;  %v3858_v8 = vld [vmem:[#allocation7 + $0xac] sm:$0xf] }
 0x36b   :  { %v3269_v16 = vor.u32 %v3808_v11, %v3268_v9  ;;  %v3479_v9 = vld [vmem:[#allocation7 + $0xb8] sm:$0xf0] }
 0x36c   :  { %v1344_v21 = vsel %vm1343_vm6, %v3942_v12, %v1340_v1  ;;  %v3822_v12 = vld [vmem:[#allocation7 + $0x8c] sm:$0xf]  ;;  %v3819_v1 = vld [vmem:[#allocation7 + $0x6c] sm:$0xf0] }
 0x36d   :  { %v1349_v22 = vsel %vm1346_vm7, %v1348_v20, %v1344_v21  ;;  %v3817_v20 = vld [vmem:[#allocation7 + $0x64] sm:$0xf]  ;;  %v3337_v21 = vor.u32 %v3822_v12, %v3334_v13  ;;  %v3309_v32 = vor.u32 %v3819_v1, %v3308_v18  ;;  %v3806_v12 = vld [vmem:[#allocation7 + $0xc] sm:$0xf]  ;;  %v3270_v13 = vld [vmem:[#allocation7 + $0x18] sm:$0xf0] }
 0x36e   :  { %v1356_v57 = vrot.slane %v1349_v22, 1  ;;  %v1359_v25 = vmul.f32 %v3944_v23, %v1349_v22  ;;  %v1362_v10 = vrot.slane %v1349_v22, 2  ;;  %v3310_v22 = vld [vmem:[#allocation7 + $0x70] sm:$0xf0]  ;;  %v3820_v23 = vld [vmem:[#allocation7 + $0x74] sm:$0xf0]  ;;  %v3273_v18 = vor.u32 %v3806_v12, %v3270_v13 }
 0x36f   :  { %v3313_v34 = vor.u32 %v3817_v20, %v3310_v22  ;;  %1896 = vmatpush.bf16.msra.mxu3 %v3337_v21  ;;  %1858 = vmatpush.bf16.msrb.mxu0 %v3309_v32  ;;  %v3453_v13 = vld [vmem:[#allocation7 + $0x80] sm:$0xf] }
 0x370   :  { %v1358_v24 = vmul.f32 %v1356_v57, %v4191_v19  ;;  %v3380_v19 = vld [vmem:[#allocation7 + $0xe8] sm:$0xf] }
 0x371   :  { %v3381_v37 = vor.u32 %v3836_v35, %v3380_v19  ;;  %v3316_v57 = vld [vmem:[#allocation7 + $0x68] sm:$0xf]  ;;  %v3292_v35 = vld [vmem:[#allocation7 + $0x40] sm:$0xf]  ;;  %1871 = vmatpush.bf16.msrb.mxu1 %v3313_v34 }
 0x372   :  { %v4198_v26 = vadd.f32 %v1359_v25, %v1358_v24  ;;  %v3317_v19 = vor.u32 %v3820_v23, %v3316_v57  ;;  %v3293_v48 = vor.u32 %v3815_v36, %v3292_v35 }
 0x373   :  { %1880 = vmatpush.bf16.msra.mxu2 %v3381_v37  ;;  %v3813_v37 = vld [vmem:[#allocation7 + $0x44] sm:$0xf] }
 0x374   :  { %3945 = vtanh.f32 %v4198_v26  ;;  %1859 = vmatpush.bf16.msrb.mxu0 %v3293_v48  ;;  %v3485_v48 = vld [vmem:[#allocation7 + $0xc0] sm:$0xf] }
 0x377   :  { %1881 = vmatpush.bf16.msra.mxu2 %v3365_v50  ;;  %v3297_v50 = vor.u32 %v3813_v37, %v3294_v41 }
 0x378   :  { %1860 = vmatpush.bf16.msrb.mxu0 %v3277_v0  ;;  %v3857_v0 = vld [vmem:[#allocation7 + $0xa4] sm:$0xf] }
 0x379   :  { %1872 = vmatpush.bf16.msrb.mxu1 %v3297_v50  ;;  %v3863_v50 = vld [vmem:[#allocation7 + $0xcc] sm:$0xf0] }
 0x37a   :  { %v3946_v27 = vpop.eup %3945  ;;  %v3486_v53 = vor.u32 %v3863_v50, %v3485_v48  ;;  %v3429_v50 = vld [vmem:[#allocation7 + $0x48] sm:$0xf] }
 0x37b   :  { %v1364_v28 = vmul.f32 %v3946_v27, %v1362_v10  ;;  %1882 = vmatpush.bf16.msra.mxu2 %v3349_v3  ;;  %v3818_v10 = vld [vmem:[#allocation7 + $0x6c] sm:$0xf]  ;;  %v3318_v27 = vld [vmem:[#allocation7 + $0x78] sm:$0xf0] }
 0x37c   :  { %v3321_v40 = vor.u32 %v3818_v10, %v3318_v27 }
 0x37d   :  { %1365 = vst [vmem:[#allocation3 + $0x3] sm:$0x1] %v1364_v28  ;;  %v1368_v29 = vpack.c.bf16 %v1364_v28, %v1364_v28  ;;  %1873 = vmatpush.bf16.msrb.mxu1 %v3281_v2  ;;  %v3471_v2 = vld [vmem:[#allocation7 + $0xb0] sm:$0xf0] }
 0x37e   :  { %1897 = vmatpush.bf16.msra.mxu3 %v3321_v40  ;;  %v3865_v40 = vld [vmem:[#allocation7 + $0xe4] sm:$0xf]  ;;  %v3474_v11 = vor.u32 %v3857_v0, %v3471_v2 }
 0x37f   :  { %1569 = vmatmul.bf16.vlgmr.msra.gmra.mxu0 %v1368_v29  ;;  %1582 = vmatmul.bf16.vlgmr.msra.gmra.mxu1 %v1368_v29 }
 0x380   :  { %1595 = vmatmul.bf16.vlgmr.msrb.gmra.mxu2 %v1368_v29  ;;  %1608 = vmatmul.bf16.vlgmr.msrb.gmra.mxu3 %v1368_v29 }
 0x381   :  { %1883 = vmatpush.bf16.msra.mxu2 %v3333_v17  ;;  %1874 = vmatpush.bf16.msrb.mxu1 %v3265_v15  ;;  %v3482_v15 = vor.u32 %v3858_v8, %v3479_v9  ;;  %v3415_v8 = vld [vmem:[#allocation7 + $0x38] sm:$0xf0] }
 0x382   :  { %1898 = vmatpush.bf16.msra.mxu3 %v3305_v56  ;;  %v3864_v56 = vld [vmem:[#allocation7 + $0xd4] sm:$0xf0] }
 0x385   :  { %1884 = vmatpush.bf16.msra.mxu2 %v3317_v19 }
 0x386   :  { %1899 = vmatpush.bf16.msra.mxu3 %v3289_v7  ;;  %v3860_v7 = vld [vmem:[#allocation7 + $0xb4] sm:$0xf0] }
 0x389   :  { %1885 = vmatpush.bf16.msra.mxu2 %v3301_v51  ;;  %v3861_v51 = vld [vmem:[#allocation7 + $0xc4] sm:$0xf] }
 0x38a   :  { %1900 = vmatpush.bf16.msra.mxu3 %v3273_v18  ;;  %v3490_v54 = vor.u32 %v3861_v51, %v3487_v52  ;;  %v3461_v18 = vld [vmem:[#allocation7 + $0x88] sm:$0xf]  ;;  %v3848_v51 = vld [vmem:[#allocation7 + $0x54] sm:$0xf0] }
 0x3fc   :  { %v1570_v59 = vpop.f32.mrf.mxu0  ;;  %v1583_v60 = vpop.f32.mrf.mxu1 }
 0x3fd   :  { %v1617_v14 = vrot.slane %v1583_v60, 7 }
 0x3ff   :  { %v1620_v38 = vsel %vm445_vm3, %v1570_v59, %v1617_v14  ;;  %v3812_v59 = vld [vmem:[#allocation7 + $0x34] sm:$0xf0]  ;;  %v3261_v14 = vor.u32 %v3807_v5, %v3260_v4 }
 0x400   :  { %v3285_v3 = vor.u32 %v3812_v59, %v3284_v58  ;;  %v3862_v58 = vld [vmem:[#allocation7 + $0xcc] sm:$0xf] }
 0x401   :  { %1861 = vmatpush.bf16.msrb.mxu0 %v3261_v14  ;;  %v3855_v14 = vld [vmem:[#allocation7 + $0x8c] sm:$0xf0] }
 0x402   :  { %1886 = vmatpush.bf16.msra.mxu2 %v3285_v3  ;;  %v3477_v3 = vld [vmem:[#allocation7 + $0xa8] sm:$0xf] }
 0x403   :  { %v1596_v24 = vpop.f32.mrf.mxu2  ;;  %v1609_v25 = vpop.f32.mrf.mxu3  ;;  %v3478_v12 = vor.u32 %v3860_v7, %v3477_v3  ;;  %v3413_v3 = vld [vmem:[#allocation7 + $0x28] sm:$0xf]  ;;  %v3842_v7 = vld [vmem:[#allocation7 + $0x2c] sm:$0xf] }
 0x404   :  { %v1618_v28 = vrot.slane %v1596_v24, 6  ;;  %v1619_v29 = vrot.slane %v1609_v25, 5  ;;  %v1572_v30 = vpop.f32.mrf.mxu0  ;;  %v1585_v31 = vpop.f32.mrf.mxu1 }
 0x406   :  { %v1621_v39 = vsel %vm447_vm2, %v1618_v28, %v1619_v29  ;;  %1887 = vmatpush.bf16.msra.mxu2 %v3269_v16  ;;  %v3853_v16 = vld [vmem:[#allocation7 + $0x84] sm:$0xf] }
 0x407   :  { %v1622_v44 = vsel %vm449_vm4, %v1620_v38, %v1621_v39  ;;  %v3501_v38 = vld [vmem:[#allocation7 + $0xe0] sm:$0xf]  ;;  %v3867_v39 = vld [vmem:[#allocation7 + $0xec] sm:$0xf0] }
 0x408   :  { %v1624_v47 = vadd.f32 %v1622_v44, %v1367_v33  ;;  %v3502_v41 = vor.u32 %v3867_v39, %v3501_v38  ;;  %v3506_v44 = vor.u32 %v3865_v40, %v3503_v42 }
 0x40a   :  { %v3257_v55 = vmul.f32 -1.442695, %v1624_v47  ;;  %v1645_v22 = vrot.slane %v1624_v47, 3  ;;  %v3511_v47 = vld [vmem:[#allocation7 + $0xf8] sm:$0xf0]  ;;  %2147 = vmatpush.bf16.msra.mxu0 %v3502_v41  ;;  %2160 = vmatpush.bf16.msra.mxu1 %v3506_v44 }
 0x40b   :  { %v1598_v60 = vpop.f32.mrf.mxu2  ;;  %v1611_v61 = vpop.f32.mrf.mxu3  ;;  %v3514_v49 = vor.u32 %v3866_v46, %v3511_v47  ;;  %v1660_v41 = vld [vmem:[#allocation2 + $0x5] ss:$8 sm:$0xf]  ;;  %v3847_v44 = vld [vmem:[#allocation7 + $0x4c] sm:$0xf0] }
 0x40c   :  { %3947 = vpow2.f32 %v3257_v55  ;;  %v3493_v55 = vld [vmem:[#allocation7 + $0xc8] sm:$0xf]  ;;  %v3495_v60 = vld [vmem:[#allocation7 + $0xd8] sm:$0xf0]  ;;  %v3469_v61 = vld [vmem:[#allocation7 + $0xa0] sm:$0xf] }
 0x40d   :  { %2186 = vmatpush.bf16.msrb.mxu3 %v3514_v49  ;;  %v3494_v59 = vor.u32 %v3864_v56, %v3493_v55  ;;  %v3498_v63 = vor.u32 %v3862_v58, %v3495_v60  ;;  %v3470_v6 = vor.u32 %v3859_v62, %v3469_v61  ;;  %v3423_v49 = vld [vmem:[#allocation7 + $0x50] sm:$0xf0]  ;;  %v3405_v58 = vld [vmem:[#allocation7 + $0x20] sm:$0xf]  ;;  %v3430_v60 = vor.u32 %v3848_v51, %v3429_v50  ;;  %v3843_v61 = vld [vmem:[#allocation7 + $0x2c] sm:$0xf0] }
 0x40e   :  { %2148 = vmatpush.bf16.msra.mxu0 %v3486_v53  ;;  %2161 = vmatpush.bf16.msra.mxu1 %v3490_v54  ;;  %v3846_v53 = vld [vmem:[#allocation7 + $0x4c] sm:$0xf]  ;;  %v3431_v54 = vld [vmem:[#allocation7 + $0x58] sm:$0xf0]  ;;  %v3841_v62 = vld [vmem:[#allocation7 + $0x24] sm:$0xf]  ;;  %v3406_v9 = vor.u32 %v3843_v61, %v3405_v58 }
 0x40f   :  { %v3434_v2 = vor.u32 %v3846_v53, %v3431_v54  ;;  %v3632_v50 = vld [vmem:[#allocation7 + $0xf0] sm:$0xf0]  ;;  %v3900_v51 = vld [vmem:[#allocation7 + $0xf4] sm:$0xf0]  ;;  %v3898_v54 = vld [vmem:[#allocation7 + $0xec] sm:$0xf] }
 0x410   :  { %v3616_v61 = vld [vmem:[#allocation7 + $0xd0] sm:$0xf0] }
 0x411   :  { %2187 = vmatpush.bf16.msrb.mxu3 %v3498_v63  ;;  %v3407_v63 = vld [vmem:[#allocation7 + $0x30] sm:$0xf0] }
 0x412   :  { %v3948_v17 = vpop.eup %3947  ;;  %2149 = vmatpush.bf16.msra.mxu0 %v3470_v6  ;;  %2162 = vmatpush.bf16.msra.mxu1 %v3474_v11  ;;  %v3410_v11 = vor.u32 %v3841_v62, %v3407_v63 }
 0x413   :  { %v1628_v1 = vadd.f32 1.0, %v3948_v17  ;;  %v3455_v17 = vld [vmem:[#allocation7 + $0x90] sm:$0xf0] }
 0x415   :  { %3949 = vrcp.f32 %v1628_v1  ;;  %v1640_v23 = vand.u32 2147483648, %v1628_v1  ;;  %v1638_v25 = vand.u32 2147483647, %v1628_v1  ;;  %vm1634_vm9 = vweird.f32 %v1628_v1  ;;  %2188 = vmatpush.bf16.msrb.mxu3 %v3482_v15  ;;  %v3837_v15 = vld [vmem:[#allocation7 + $0x4] sm:$0xf] }
 0x416   :  { %3951 = vtanh.f32 %v1645_v22 }
 0x417   :  { %v1641_v27 = vor.u32 1.1754944e-38, %v1640_v23  ;;  %vm1639_vm11 = vcmp.eq.f32.partialorder %v1638_v25, 8.507059e+37  ;;  %v3458_v23 = vor.u32 %v3853_v16, %v3455_v17  ;;  %v3437_v25 = vld [vmem:[#allocation7 + $0x60] sm:$0xf]  ;;  %v3418_v16 = vor.u32 %v3842_v7, %v3415_v8  ;;  %v3391_v17 = vld [vmem:[#allocation7 + $0x10] sm:$0xf0] }
 0x418   :  { %v3891_v7 = vld [vmem:[#allocation7 + $0xac] sm:$0xf0] }
 0x419   :  { %2163 = vmatpush.bf16.msra.mxu1 %v3458_v23 }
 0x41b   :  { %v3950_v20 = vpop.eup %3949 }
 0x41c   :  { %v1630_v21 = vmul.f32 %v3950_v20, %v1628_v1  ;;  %vm1635_vm8 = vweird.f32 %v3950_v20  ;;  %v3952_v31 = vpop.eup %3951  ;;  %v3856_v1 = vld [vmem:[#allocation7 + $0x94] sm:$0xf0] }
 0x41d   :  { %vm1636_vm10 = vmor %vm1634_vm9, %vm1635_vm8 }
 0x41e   :  { %v1631_v57 = vsub.f32 1.0, %v1630_v21  ;;  %v3463_v21 = vld [vmem:[#allocation7 + $0x98] sm:$0xf0] }
 0x420   :  { %v1632_v24 = vmul.f32 %v3950_v20, %v1631_v57  ;;  %v3454_v57 = vor.u32 %v3855_v14, %v3453_v13  ;;  %v3389_v13 = vld [vmem:[#allocation7] sm:$0xf]  ;;  %v3839_v14 = vld [vmem:[#allocation7 + $0xc] sm:$0xf0] }
 0x422   :  { %v1633_v10 = vadd.f32 %v3950_v20, %v1632_v24  ;;  %v3462_v24 = vor.u32 %v3856_v1, %v3461_v18  ;;  %2150 = vmatpush.bf16.msra.mxu0 %v3454_v57  ;;  %v3397_v18 = vld [vmem:[#allocation7 + $0x8] sm:$0xf]  ;;  %v3840_v1 = vld [vmem:[#allocation7 + $0x14] sm:$0xf0]  ;;  %v3394_v57 = vor.u32 %v3837_v15, %v3391_v17  ;;  %v3890_v17 = vld [vmem:[#allocation7 + $0xac] sm:$0xf] }
 0x423   :  { %v3398_v23 = vor.u32 %v3840_v1, %v3397_v18  ;;  %v3608_v18 = vld [vmem:[#allocation7 + $0xb8] sm:$0xf0] }
 0x424   :  { %v1637_v28 = vsel %vm1636_vm10, %v3950_v20, %v1633_v10  ;;  %v3854_v20 = vld [vmem:[#allocation7 + $0x8c] sm:$0xf]  ;;  %v3851_v10 = vld [vmem:[#allocation7 + $0x6c] sm:$0xf0] }
 0x425   :  { %v1642_v29 = vsel %vm1639_vm11, %v1641_v27, %v1637_v28  ;;  %v3849_v27 = vld [vmem:[#allocation7 + $0x64] sm:$0xf]  ;;  %v3466_v28 = vor.u32 %v3854_v20, %v3463_v21  ;;  %v3438_v40 = vor.u32 %v3851_v10, %v3437_v25  ;;  %v3838_v20 = vld [vmem:[#allocation7 + $0xc] sm:$0xf]  ;;  %v3399_v21 = vld [vmem:[#allocation7 + $0x18] sm:$0xf0] }
 0x426   :  { %v1649_v30 = vrot.slane %v1642_v29, 1  ;;  %v1652_v33 = vmul.f32 %v3952_v31, %v1642_v29  ;;  %v1655_v19 = vrot.slane %v1642_v29, 2  ;;  %v3439_v29 = vld [vmem:[#allocation7 + $0x70] sm:$0xf0]  ;;  %v3852_v31 = vld [vmem:[#allocation7 + $0x74] sm:$0xf0]  ;;  %v3402_v25 = vor.u32 %v3838_v20, %v3399_v21 }
 0x427   :  { %v3442_v42 = vor.u32 %v3849_v27, %v3439_v29  ;;  %2189 = vmatpush.bf16.msrb.mxu3 %v3466_v28  ;;  %2151 = vmatpush.bf16.msra.mxu0 %v3438_v40  ;;  %v3582_v21 = vld [vmem:[#allocation7 + $0x80] sm:$0xf] }
 0x428   :  { %v1651_v32 = vmul.f32 %v1649_v30, %v4198_v26  ;;  %v3509_v26 = vld [vmem:[#allocation7 + $0xe8] sm:$0xf] }
 0x429   :  { %v3510_v45 = vor.u32 %v3868_v43, %v3509_v26  ;;  %v3445_v30 = vld [vmem:[#allocation7 + $0x68] sm:$0xf]  ;;  %v3421_v43 = vld [vmem:[#allocation7 + $0x40] sm:$0xf]  ;;  %2164 = vmatpush.bf16.msra.mxu1 %v3442_v42 }
 0x42a   :  { %v4205_v34 = vadd.f32 %v1652_v33, %v1651_v32  ;;  %v3446_v26 = vor.u32 %v3852_v31, %v3445_v30  ;;  %v3422_v56 = vor.u32 %v3847_v44, %v3421_v43 }
 0x42b   :  { %2173 = vmatpush.bf16.msrb.mxu2 %v3510_v45  ;;  %v3845_v45 = vld [vmem:[#allocation7 + $0x44] sm:$0xf] }
 0x42c   :  { %3953 = vtanh.f32 %v4205_v34  ;;  %2152 = vmatpush.bf16.msra.mxu0 %v3422_v56  ;;  %v3614_v56 = vld [vmem:[#allocation7 + $0xc0] sm:$0xf] }
 0x42f   :  { %2174 = vmatpush.bf16.msrb.mxu2 %v3494_v59  ;;  %v3426_v59 = vor.u32 %v3845_v45, %v3423_v49 }
 0x430   :  { %2153 = vmatpush.bf16.msra.mxu0 %v3406_v9  ;;  %v3889_v9 = vld [vmem:[#allocation7 + $0xa4] sm:$0xf] }
 0x431   :  { %2165 = vmatpush.bf16.msra.mxu1 %v3426_v59  ;;  %v3895_v59 = vld [vmem:[#allocation7 + $0xcc] sm:$0xf0] }
 0x432   :  { %v3954_v35 = vpop.eup %3953  ;;  %v3615_v62 = vor.u32 %v3895_v59, %v3614_v56  ;;  %v3558_v59 = vld [vmem:[#allocation7 + $0x48] sm:$0xf] }
 0x433   :  { %v1657_v36 = vmul.f32 %v3954_v35, %v1655_v19  ;;  %2175 = vmatpush.bf16.msrb.mxu2 %v3478_v12  ;;  %v3850_v19 = vld [vmem:[#allocation7 + $0x6c] sm:$0xf]  ;;  %v3447_v35 = vld [vmem:[#allocation7 + $0x78] sm:$0xf0] }
 0x434   :  { %v3450_v48 = vor.u32 %v3850_v19, %v3447_v35 }
 0x435   :  { %1658 = vst [vmem:[#allocation3 + $0x4] sm:$0x1] %v1657_v36  ;;  %v1661_v37 = vpack.c.bf16 %v1657_v36, %v1657_v36  ;;  %2166 = vmatpush.bf16.msra.mxu1 %v3410_v11  ;;  %v3600_v11 = vld [vmem:[#allocation7 + $0xb0] sm:$0xf0] }
 0x436   :  { %2190 = vmatpush.bf16.msrb.mxu3 %v3450_v48  ;;  %v3897_v48 = vld [vmem:[#allocation7 + $0xe4] sm:$0xf]  ;;  %v3603_v1 = vor.u32 %v3889_v9, %v3600_v11 }
 0x437   :  { %1862 = vmatmul.bf16.vlgmr.msrb.gmra.mxu0 %v1661_v37  ;;  %1875 = vmatmul.bf16.vlgmr.msrb.gmra.mxu1 %v1661_v37 }
 0x438   :  { %1888 = vmatmul.bf16.vlgmr.msra.gmra.mxu2 %v1661_v37  ;;  %1901 = vmatmul.bf16.vlgmr.msra.gmra.mxu3 %v1661_v37 }
 0x439   :  { %2176 = vmatpush.bf16.msrb.mxu2 %v3462_v24  ;;  %2167 = vmatpush.bf16.msra.mxu1 %v3394_v57  ;;  %v3611_v57 = vor.u32 %v3890_v17, %v3608_v18  ;;  %v3544_v17 = vld [vmem:[#allocation7 + $0x38] sm:$0xf0] }
 0x43a   :  { %2191 = vmatpush.bf16.msrb.mxu3 %v3434_v2  ;;  %v3896_v2 = vld [vmem:[#allocation7 + $0xd4] sm:$0xf0] }
 0x43d   :  { %2177 = vmatpush.bf16.msrb.mxu2 %v3446_v26 }
 0x43e   :  { %2192 = vmatpush.bf16.msrb.mxu3 %v3418_v16  ;;  %v3892_v16 = vld [vmem:[#allocation7 + $0xb4] sm:$0xf0] }
 0x441   :  { %2178 = vmatpush.bf16.msrb.mxu2 %v3430_v60  ;;  %v3893_v60 = vld [vmem:[#allocation7 + $0xc4] sm:$0xf] }
 0x442   :  { %2193 = vmatpush.bf16.msrb.mxu3 %v3402_v25  ;;  %v3619_v63 = vor.u32 %v3893_v60, %v3616_v61  ;;  %v3590_v25 = vld [vmem:[#allocation7 + $0x88] sm:$0xf]  ;;  %v3880_v60 = vld [vmem:[#allocation7 + $0x54] sm:$0xf0] }
 0x4b4   :  { %v1863_v4 = vpop.f32.mrf.mxu0  ;;  %v1876_v5 = vpop.f32.mrf.mxu1 }
 0x4b5   :  { %v1910_v22 = vrot.slane %v1876_v5, 7 }
 0x4b7   :  { %v1913_v46 = vsel %vm445_vm3, %v1863_v4, %v1910_v22  ;;  %v3844_v4 = vld [vmem:[#allocation7 + $0x34] sm:$0xf0]  ;;  %v3390_v22 = vor.u32 %v3839_v14, %v3389_v13 }
 0x4b8   :  { %v3414_v12 = vor.u32 %v3844_v4, %v3413_v3  ;;  %v3894_v3 = vld [vmem:[#allocation7 + $0xcc] sm:$0xf] }
 0x4b9   :  { %2154 = vmatpush.bf16.msra.mxu0 %v3390_v22  ;;  %v3887_v22 = vld [vmem:[#allocation7 + $0x8c] sm:$0xf0] }
 0x4ba   :  { %2179 = vmatpush.bf16.msrb.mxu2 %v3414_v12  ;;  %v3606_v12 = vld [vmem:[#allocation7 + $0xa8] sm:$0xf] }
 0x4bb   :  { %v1889_v32 = vpop.f32.mrf.mxu2  ;;  %v1902_v33 = vpop.f32.mrf.mxu3  ;;  %v3607_v20 = vor.u32 %v3892_v16, %v3606_v12  ;;  %v3542_v12 = vld [vmem:[#allocation7 + $0x28] sm:$0xf]  ;;  %v3874_v16 = vld [vmem:[#allocation7 + $0x2c] sm:$0xf] }
 0x4bc   :  { %v1911_v36 = vrot.slane %v1889_v32, 6  ;;  %v1912_v37 = vrot.slane %v1902_v33, 5  ;;  %v1865_v38 = vpop.f32.mrf.mxu0  ;;  %v1878_v39 = vpop.f32.mrf.mxu1 }
 0x4be   :  { %v1914_v47 = vsel %vm447_vm2, %v1911_v36, %v1912_v37  ;;  %2180 = vmatpush.bf16.msrb.mxu2 %v3398_v23  ;;  %v3885_v23 = vld [vmem:[#allocation7 + $0x84] sm:$0xf] }
 0x4bf   :  { %v1915_v52 = vsel %vm449_vm4, %v1913_v46, %v1914_v47  ;;  %v3630_v46 = vld [vmem:[#allocation7 + $0xe0] sm:$0xf]  ;;  %v3899_v47 = vld [vmem:[#allocation7 + $0xec] sm:$0xf0] }
 0x4c0   :  { %v1917_v55 = vadd.f32 %v1915_v52, %v1660_v41  ;;  %v3631_v49 = vor.u32 %v3899_v47, %v3630_v46  ;;  %v3635_v52 = vor.u32 %v3897_v48, %v3632_v50 }
 0x4c2   :  { %v3386_v0 = vmul.f32 -1.442695, %v1917_v55  ;;  %v1938_v29 = vrot.slane %v1917_v55, 3  ;;  %v3640_v55 = vld [vmem:[#allocation7 + $0xf8] sm:$0xf0]  ;;  %2440 = vmatpush.bf16.msrb.mxu0 %v3631_v49  ;;  %2453 = vmatpush.bf16.msrb.mxu1 %v3635_v52 }
 0x4c3   :  { %v1891_v5 = vpop.f32.mrf.mxu2  ;;  %v1904_v6 = vpop.f32.mrf.mxu3  ;;  %v3643_v58 = vor.u32 %v3898_v54, %v3640_v55  ;;  %v1953_v49 = vld [vmem:[#allocation2 + $0x6] ss:$8 sm:$0xf]  ;;  %v3879_v52 = vld [vmem:[#allocation7 + $0x4c] sm:$0xf0] }
 0x4c4   :  { %3955 = vpow2.f32 %v3386_v0  ;;  %v3622_v0 = vld [vmem:[#allocation7 + $0xc8] sm:$0xf]  ;;  %v3624_v5 = vld [vmem:[#allocation7 + $0xd8] sm:$0xf0]  ;;  %v3598_v6 = vld [vmem:[#allocation7 + $0xa0] sm:$0xf] }
 0x4c5   :  { %2479 = vmatpush.bf16.msra.mxu3 %v3643_v58  ;;  %v3623_v4 = vor.u32 %v3896_v2, %v3622_v0  ;;  %v3627_v8 = vor.u32 %v3894_v3, %v3624_v5  ;;  %v3599_v15 = vor.u32 %v3891_v7, %v3598_v6  ;;  %v3552_v58 = vld [vmem:[#allocation7 + $0x50] sm:$0xf0]  ;;  %v3534_v3 = vld [vmem:[#allocation7 + $0x20] sm:$0xf]  ;;  %v3559_v5 = vor.u32 %v3880_v60, %v3558_v59  ;;  %v3875_v6 = vld [vmem:[#allocation7 + $0x2c] sm:$0xf0] }
 0x4c6   :  { %2441 = vmatpush.bf16.msrb.mxu0 %v3615_v62  ;;  %2454 = vmatpush.bf16.msrb.mxu1 %v3619_v63  ;;  %v3878_v62 = vld [vmem:[#allocation7 + $0x4c] sm:$0xf]  ;;  %v3560_v63 = vld [vmem:[#allocation7 + $0x58] sm:$0xf0]  ;;  %v3873_v7 = vld [vmem:[#allocation7 + $0x24] sm:$0xf]  ;;  %v3535_v18 = vor.u32 %v3875_v6, %v3534_v3 }
 0x4c7   :  { %v3563_v11 = vor.u32 %v3878_v62, %v3560_v63 }
 0x4c9   :  { %2480 = vmatpush.bf16.msra.mxu3 %v3627_v8  ;;  %v3536_v8 = vld [vmem:[#allocation7 + $0x30] sm:$0xf0] }
 0x4ca   :  { %v3956_v24 = vpop.eup %3955  ;;  %2442 = vmatpush.bf16.msrb.mxu0 %v3599_v15  ;;  %2455 = vmatpush.bf16.msrb.mxu1 %v3603_v1  ;;  %v3539_v1 = vor.u32 %v3873_v7, %v3536_v8  ;;  %v2556_v8 = vld [vmem:[#allocation9 + $0x78] sm:$0xff] }
 0x4cb   :  { %v1921_v10 = vadd.f32 1.0, %v3956_v24  ;;  %v3584_v24 = vld [vmem:[#allocation7 + $0x90] sm:$0xf0] }
 0x4cd   :  { %3957 = vrcp.f32 %v1921_v10  ;;  %v1933_v31 = vand.u32 2147483648, %v1921_v10  ;;  %v1931_v33 = vand.u32 2147483647, %v1921_v10  ;;  %vm1927_vm13 = vweird.f32 %v1921_v10  ;;  %2481 = vmatpush.bf16.msra.mxu3 %v3611_v57  ;;  %v3869_v57 = vld [vmem:[#allocation7 + $0x4] sm:$0xf] }
 0x4ce   :  { %3959 = vtanh.f32 %v1938_v29 }
 0x4cf   :  { %v1934_v35 = vor.u32 1.1754944e-38, %v1933_v31  ;;  %vm1932_vm15 = vcmp.eq.f32.partialorder %v1931_v33, 8.507059e+37  ;;  %v3587_v31 = vor.u32 %v3885_v23, %v3584_v24  ;;  %v3566_v33 = vld [vmem:[#allocation7 + $0x60] sm:$0xf]  ;;  %v3547_v23 = vor.u32 %v3874_v16, %v3544_v17  ;;  %v3520_v24 = vld [vmem:[#allocation7 + $0x10] sm:$0xf0] }
 0x4d0   :  { %v2551_v16 = vld [vmem:[#allocation9 + $0x50] sm:$0xff]  ;;  %v2550_v17 = vld [vmem:[#allocation9 + $0x48] sm:$0xff] }
 0x4d1   :  { %2456 = vmatpush.bf16.msrb.mxu1 %v3587_v31 }
 0x4d3   :  { %v3958_v27 = vpop.eup %3957 }
 0x4d4   :  { %v1923_v28 = vmul.f32 %v3958_v27, %v1921_v10  ;;  %vm1928_vm12 = vweird.f32 %v3958_v27  ;;  %v3960_v39 = vpop.eup %3959  ;;  %v3888_v10 = vld [vmem:[#allocation7 + $0x94] sm:$0xf0] }
 0x4d5   :  { %vm1929_vm14 = vmor %vm1927_vm13, %vm1928_vm12 }
 0x4d6   :  { %v1924_v30 = vsub.f32 1.0, %v1923_v28  ;;  %v3592_v28 = vld [vmem:[#allocation7 + $0x98] sm:$0xf0] }
 0x4d8   :  { %v1925_v32 = vmul.f32 %v3958_v27, %v1924_v30  ;;  %v3583_v30 = vor.u32 %v3887_v22, %v3582_v21  ;;  %v3518_v21 = vld [vmem:[#allocation7] sm:$0xf]  ;;  %v3871_v22 = vld [vmem:[#allocation7 + $0xc] sm:$0xf0] }
 0x4da   :  { %v1926_v19 = vadd.f32 %v3958_v27, %v1925_v32  ;;  %v3591_v32 = vor.u32 %v3888_v10, %v3590_v25  ;;  %2443 = vmatpush.bf16.msrb.mxu0 %v3583_v30  ;;  %v3526_v25 = vld [vmem:[#allocation7 + $0x8] sm:$0xf]  ;;  %v3872_v10 = vld [vmem:[#allocation7 + $0x14] sm:$0xf0]  ;;  %v3523_v30 = vor.u32 %v3869_v57, %v3520_v24 }
 0x4db   :  { %v3527_v31 = vor.u32 %v3872_v10, %v3526_v25  ;;  %v2548_v57 = vld [vmem:[#allocation9 + $0x38] sm:$0xff]  ;;  %v2547_v10 = vld [vmem:[#allocation9 + $0x30] sm:$0xff] }
 0x4dc   :  { %v1930_v36 = vsel %vm1929_vm14, %v3958_v27, %v1926_v19  ;;  %v3886_v27 = vld [vmem:[#allocation7 + $0x8c] sm:$0xf]  ;;  %v3883_v19 = vld [vmem:[#allocation7 + $0x6c] sm:$0xf0] }
 0x4dd   :  { %v1935_v37 = vsel %vm1932_vm15, %v1934_v35, %v1930_v36  ;;  %v3881_v35 = vld [vmem:[#allocation7 + $0x64] sm:$0xf]  ;;  %v3595_v36 = vor.u32 %v3886_v27, %v3592_v28  ;;  %v3567_v48 = vor.u32 %v3883_v19, %v3566_v33  ;;  %v3870_v27 = vld [vmem:[#allocation7 + $0xc] sm:$0xf]  ;;  %v3528_v28 = vld [vmem:[#allocation7 + $0x18] sm:$0xf0] }
 0x4de   :  { %v1942_v38 = vrot.slane %v1935_v37, 1  ;;  %v1945_v41 = vmul.f32 %v3960_v39, %v1935_v37  ;;  %v1948_v26 = vrot.slane %v1935_v37, 2  ;;  %v3568_v37 = vld [vmem:[#allocation7 + $0x70] sm:$0xf0]  ;;  %v3884_v39 = vld [vmem:[#allocation7 + $0x74] sm:$0xf0]  ;;  %v3531_v33 = vor.u32 %v3870_v27, %v3528_v28 }
 0x4df   :  { %v3571_v50 = vor.u32 %v3881_v35, %v3568_v37  ;;  %2482 = vmatpush.bf16.msra.mxu3 %v3595_v36  ;;  %2444 = vmatpush.bf16.msrb.mxu0 %v3567_v48  ;;  %v2546_v28 = vld [vmem:[#allocation9 + $0x28] sm:$0xff] }
 0x4e0   :  { %v1944_v40 = vmul.f32 %v1942_v38, %v4205_v34  ;;  %v3638_v34 = vld [vmem:[#allocation7 + $0xe8] sm:$0xf] }
 0x4e1   :  { %v3639_v53 = vor.u32 %v3900_v51, %v3638_v34  ;;  %v3574_v38 = vld [vmem:[#allocation7 + $0x68] sm:$0xf]  ;;  %v3550_v51 = vld [vmem:[#allocation7 + $0x40] sm:$0xf]  ;;  %2457 = vmatpush.bf16.msrb.mxu1 %v3571_v50 }
 0x4e2   :  { %v4212_v42 = vadd.f32 %v1945_v41, %v1944_v40  ;;  %v3575_v34 = vor.u32 %v3884_v39, %v3574_v38  ;;  %v3551_v2 = vor.u32 %v3879_v52, %v3550_v51 }
 0x4e3   :  { %2466 = vmatpush.bf16.msra.mxu2 %v3639_v53  ;;  %v3877_v53 = vld [vmem:[#allocation7 + $0x44] sm:$0xf] }
 0x4e4   :  { %3961 = vtanh.f32 %v4212_v42  ;;  %2445 = vmatpush.bf16.msrb.mxu0 %v3551_v2  ;;  %v2246_v2 = vld [vmem:[#allocation2 + $0x7] ss:$8 sm:$0xf] }
 0x4e7   :  { %2467 = vmatpush.bf16.msra.mxu2 %v3623_v4  ;;  %v3555_v4 = vor.u32 %v3877_v53, %v3552_v58 }
 0x4e8   :  { %2446 = vmatpush.bf16.msrb.mxu0 %v3535_v18 }
 0x4e9   :  { %2458 = vmatpush.bf16.msrb.mxu1 %v3555_v4 }
 0x4ea   :  { %v3962_v43 = vpop.eup %3961 }
 0x4eb   :  { %v1950_v44 = vmul.f32 %v3962_v43, %v1948_v26  ;;  %2468 = vmatpush.bf16.msra.mxu2 %v3607_v20  ;;  %v3882_v26 = vld [vmem:[#allocation7 + $0x6c] sm:$0xf]  ;;  %v3576_v43 = vld [vmem:[#allocation7 + $0x78] sm:$0xf0] }
 0x4ec   :  { %v3579_v56 = vor.u32 %v3882_v26, %v3576_v43 }
 0x4ed   :  { %1951 = vst [vmem:[#allocation3 + $0x5] sm:$0x1] %v1950_v44  ;;  %v1954_v45 = vpack.c.bf16 %v1950_v44, %v1950_v44  ;;  %2459 = vmatpush.bf16.msrb.mxu1 %v3539_v1 }
 0x4ee   :  { %2483 = vmatpush.bf16.msra.mxu3 %v3579_v56 }
 0x4ef   :  { %2155 = vmatmul.bf16.vlgmr.msra.gmra.mxu0 %v1954_v45  ;;  %2168 = vmatmul.bf16.vlgmr.msra.gmra.mxu1 %v1954_v45 }
 0x4f0   :  { %2181 = vmatmul.bf16.vlgmr.msrb.gmra.mxu2 %v1954_v45  ;;  %2194 = vmatmul.bf16.vlgmr.msrb.gmra.mxu3 %v1954_v45 }
 0x4f1   :  { %2469 = vmatpush.bf16.msra.mxu2 %v3591_v32  ;;  %2460 = vmatpush.bf16.msrb.mxu1 %v3523_v30 }
 0x4f2   :  { %2484 = vmatpush.bf16.msra.mxu3 %v3563_v11  ;;  %v2555_v11 = vld [vmem:[#allocation9 + $0x70] sm:$0xff] }
 0x4f5   :  { %2470 = vmatpush.bf16.msra.mxu2 %v3575_v34 }
 0x4f6   :  { %2485 = vmatpush.bf16.msra.mxu3 %v3547_v23 }
 0x4f9   :  { %2471 = vmatpush.bf16.msra.mxu2 %v3559_v5 }
 0x4fa   :  { %2486 = vmatpush.bf16.msra.mxu3 %v3531_v33 }
 0x56c   :  { %v2156_v13 = vpop.f32.mrf.mxu0  ;;  %v2169_v14 = vpop.f32.mrf.mxu1 }
 0x56d   :  { %v2203_v29 = vrot.slane %v2169_v14, 7 }
 0x56f   :  { %v2206_v54 = vsel %vm445_vm3, %v2156_v13, %v2203_v29  ;;  %v3876_v13 = vld [vmem:[#allocation7 + $0x34] sm:$0xf0]  ;;  %v3519_v29 = vor.u32 %v3871_v22, %v3518_v21 }
 0x570   :  { %v3543_v20 = vor.u32 %v3876_v13, %v3542_v12  ;;  %v2554_v13 = vld [vmem:[#allocation9 + $0x68] sm:$0xff] }
 0x571   :  { %2447 = vmatpush.bf16.msrb.mxu0 %v3519_v29 }
 0x572   :  { %2472 = vmatpush.bf16.msra.mxu2 %v3543_v20  ;;  %v2549_v20 = vld [vmem:[#allocation9 + $0x40] sm:$0xff] }
 0x573   :  { %v2182_v40 = vpop.f32.mrf.mxu2  ;;  %v2195_v41 = vpop.f32.mrf.mxu3 }
 0x574   :  { %v2204_v44 = vrot.slane %v2182_v40, 6  ;;  %v2205_v45 = vrot.slane %v2195_v41, 5  ;;  %v2158_v46 = vpop.f32.mrf.mxu0  ;;  %v2171_v47 = vpop.f32.mrf.mxu1 }
 0x575   :  { %2561 = vmatpush.msra.mxu0 %v2556_v8 }
 0x576   :  { %v2207_v55 = vsel %vm447_vm2, %v2204_v44, %v2205_v45  ;;  %2473 = vmatpush.bf16.msra.mxu2 %v3527_v31  ;;  %v2545_v31 = vld [vmem:[#allocation9 + $0x20] sm:$0xff] }
 0x577   :  { %v2208_v61 = vsel %vm449_vm4, %v2206_v54, %v2207_v55  ;;  %2562 = vmatpush.msra.mxu0 %v2555_v11 }
 0x578   :  { %v2210_v0 = vadd.f32 %v2208_v61, %v1953_v49 }
 0x579   :  { %2563 = vmatpush.msra.mxu0 %v2554_v13 }
 0x57a   :  { %v3515_v9 = vmul.f32 -1.442695, %v2210_v0  ;;  %v2231_v37 = vrot.slane %v2210_v0, 3 }
 0x57b   :  { %v2184_v14 = vpop.f32.mrf.mxu2  ;;  %v2197_v15 = vpop.f32.mrf.mxu3 }
 0x57c   :  { %3963 = vpow2.f32 %v3515_v9  ;;  %v2553_v14 = vld [vmem:[#allocation9 + $0x60] sm:$0xff]  ;;  %v2552_v15 = vld [vmem:[#allocation9 + $0x58] sm:$0xff] }
 0x57d   :  { %2564 = vmatpush.msra.mxu0 %v2553_v14 }
 0x57f   :  { %2565 = vmatpush.msra.mxu0 %v2552_v15 }
 0x581   :  { %2566 = vmatpush.msra.mxu0 %v2551_v16 }
 0x582   :  { %v3964_v32 = vpop.eup %3963 }
 0x583   :  { %v2214_v19 = vadd.f32 1.0, %v3964_v32  ;;  %2567 = vmatpush.msra.mxu0 %v2550_v17 }
 0x585   :  { %3965 = vrcp.f32 %v2214_v19  ;;  %v2226_v39 = vand.u32 2147483648, %v2214_v19  ;;  %v2224_v41 = vand.u32 2147483647, %v2214_v19  ;;  %vm2220_vm1 = vweird.f32 %v2214_v19  ;;  %2568 = vmatpush.msra.mxu0 %v2549_v20 }
 0x586   :  { %3967 = vtanh.f32 %v2231_v37 }
 0x587   :  { %v2227_v43 = vor.u32 1.1754944e-38, %v2226_v39  ;;  %vm2225_vm6 = vcmp.eq.f32.partialorder %v2224_v41, 8.507059e+37  ;;  %2569 = vmatpush.msra.mxu0 %v2548_v57  ;;  %v2541_v41 = vld [vmem:[#allocation9] sm:$0xff] }
 0x589   :  { %2570 = vmatpush.msra.mxu0 %v2547_v10 }
 0x58b   :  { %v3966_v35 = vpop.eup %3965  ;;  %2571 = vmatpush.msra.mxu0 %v2546_v28 }
 0x58c   :  { %v2216_v36 = vmul.f32 %v3966_v35, %v2214_v19  ;;  %vm2221_vm0 = vweird.f32 %v3966_v35  ;;  %v3968_v47 = vpop.eup %3967  ;;  %v2544_v19 = vld [vmem:[#allocation9 + $0x18] sm:$0xff] }
 0x58d   :  { %vm2222_vm5 = vmor %vm2220_vm1, %vm2221_vm0  ;;  %2572 = vmatpush.msra.mxu0 %v2545_v31 }
 0x58e   :  { %v2217_v38 = vsub.f32 1.0, %v2216_v36 }
 0x58f   :  { %2573 = vmatpush.msra.mxu0 %v2544_v19 }
 0x590   :  { %v2218_v40 = vmul.f32 %v3966_v35, %v2217_v38  ;;  %v2543_v38 = vld [vmem:[#allocation9 + $0x10] sm:$0xff] }
 0x591   :  { %2574 = vmatpush.msra.mxu0 %v2543_v38 }
 0x592   :  { %v2219_v26 = vadd.f32 %v3966_v35, %v2218_v40  ;;  %v2542_v40 = vld [vmem:[#allocation9 + $0x8] sm:$0xff] }
 0x593   :  { %2575 = vmatpush.msra.mxu0 %v2542_v40 }
 0x594   :  { %v2223_v44 = vsel %vm2222_vm5, %v3966_v35, %v2219_v26 }
 0x595   :  { %v2228_v45 = vsel %vm2225_vm6, %v2227_v43, %v2223_v44  ;;  %2576 = vmatpush.msra.mxu0 %v2541_v41 }
 0x596   :  { %v2235_v46 = vrot.slane %v2228_v45, 1  ;;  %v2238_v49 = vmul.f32 %v3968_v47, %v2228_v45  ;;  %v2241_v34 = vrot.slane %v2228_v45, 2 }
 0x598   :  { %v2237_v48 = vmul.f32 %v2235_v46, %v4212_v42  ;;  %v3914_v46 = vld [vmem:[%s4244_s6] ss:$0 sm:$0xff] }
 0x59a   :  { %v4219_v50 = vadd.f32 %v2238_v49, %v2237_v48 }
 0x59c   :  { %3969 = vtanh.f32 %v4219_v50 }
 0x5a2   :  { %v3970_v51 = vpop.eup %3969 }
 0x5a3   :  { %v2243_v52 = vmul.f32 %v3970_v51, %v2241_v34 }
 0x5a5   :  { %2244 = vst [vmem:[#allocation3 + $0x6] sm:$0x1] %v2243_v52  ;;  %v2247_v53 = vpack.c.bf16 %v2243_v52, %v2243_v52 }
 0x5a7   :  { %2448 = vmatmul.bf16.vlgmr.msrb.gmra.mxu0 %v2247_v53  ;;  %2461 = vmatmul.bf16.vlgmr.msrb.gmra.mxu1 %v2247_v53 }
 0x5a8   :  { %2474 = vmatmul.bf16.vlgmr.msra.gmra.mxu2 %v2247_v53  ;;  %2487 = vmatmul.bf16.vlgmr.msra.gmra.mxu3 %v2247_v53 }
 0x624   :  { %v2449_v54 = vpop.f32.mrf.mxu0  ;;  %v2462_v55 = vpop.f32.mrf.mxu1 }
 0x625   :  { %v2496_v56 = vrot.slane %v2462_v55, 7 }
 0x627   :  { %v2499_v63 = vsel %vm445_vm3, %v2449_v54, %v2496_v56 }
 0x62b   :  { %v2475_v58 = vpop.f32.mrf.mxu2  ;;  %v2488_v59 = vpop.f32.mrf.mxu3 }
 0x62c   :  { %v2497_v42 = vrot.slane %v2475_v58, 6  ;;  %v2498_v60 = vrot.slane %v2488_v59, 5  ;;  %v2451_v61 = vpop.f32.mrf.mxu0  ;;  %v2464_v62 = vpop.f32.mrf.mxu1 }
 0x62e   :  { %v2500_v0 = vsel %vm447_vm2, %v2497_v42, %v2498_v60 }
 0x62f   :  { %v2501_v3 = vsel %vm449_vm4, %v2499_v63, %v2500_v0 }
 0x630   :  { %v2503_v4 = vadd.f32 %v2501_v3, %v2246_v2 }
 0x632   :  { %v3644_v5 = vmul.f32 -1.442695, %v2503_v4  ;;  %v2524_v21 = vrot.slane %v2503_v4, 3 }
 0x633   :  { %v2477_v6 = vpop.f32.mrf.mxu2  ;;  %v2490_v7 = vpop.f32.mrf.mxu3 }
 0x634   :  { %3971 = vpow2.f32 %v3644_v5 }
 0x63a   :  { %v3972_v9 = vpop.eup %3971 }
 0x63b   :  { %v2507_v12 = vadd.f32 1.0, %v3972_v9 }
 0x63d   :  { %3973 = vrcp.f32 %v2507_v12  ;;  %v2519_v23 = vand.u32 2147483648, %v2507_v12  ;;  %v2517_v25 = vand.u32 2147483647, %v2507_v12  ;;  %vm2513_vm3 = vweird.f32 %v2507_v12 }
 0x63e   :  { %3975 = vtanh.f32 %v2524_v21 }
 0x63f   :  { %v2520_v29 = vor.u32 1.1754944e-38, %v2519_v23  ;;  %vm2518_vm7 = vcmp.eq.f32.partialorder %v2517_v25, 8.507059e+37 }
 0x643   :  { %v3974_v18 = vpop.eup %3973 }
 0x644   :  { %v2509_v1 = vmul.f32 %v3974_v18, %v2507_v12  ;;  %vm2514_vm2 = vweird.f32 %v3974_v18  ;;  %v3976_v35 = vpop.eup %3975 }
 0x645   :  { %vm2515_vm4 = vmor %vm2513_vm3, %vm2514_vm2 }
 0x646   :  { %v2510_v22 = vsub.f32 1.0, %v2509_v1 }
 0x648   :  { %v2511_v24 = vmul.f32 %v3974_v18, %v2510_v22 }
 0x64a   :  { %v2512_v27 = vadd.f32 %v3974_v18, %v2511_v24 }
 0x64c   :  { %v2516_v30 = vsel %vm2515_vm4, %v3974_v18, %v2512_v27 }
 0x64d   :  { %v2521_v32 = vsel %vm2518_vm7, %v2520_v29, %v2516_v30 }
 0x64e   :  { %v2528_v33 = vrot.slane %v2521_v32, 1  ;;  %v2531_v37 = vmul.f32 %v3976_v35, %v2521_v32  ;;  %v2534_v26 = vrot.slane %v2521_v32, 2 }
 0x650   :  { %v2530_v36 = vmul.f32 %v2528_v33, %v4219_v50 }
 0x652   :  { %v2532_v39 = vadd.f32 %v2531_v37, %v2530_v36 }
 0x654   :  { %3977 = vtanh.f32 %v2532_v39  ;;  %2539 = vst [vmem:[%s4247_s9] sm:$0x1] %v2532_v39 }
 0x65a   :  { %v3978_v43 = vpop.eup %3977 }
 0x65b   :  { %v2536_v44 = vmul.f32 %v3978_v43, %v2534_v26 }
 0x65d   :  { %2537 = vst [vmem:[#allocation3 + $0x7] sm:$0x1] %v2536_v44 }
 0x65e   :  { %2538 = vst [vmem:[%s4246_s8] sm:$0x1] %v2536_v44 }
 0x664   :  { %v2540_v45 = vld [vmem:[#allocation3] sm:$0xff] }
 0x665   :  { %2577 = vmatmul.f32.vlgmr.msra.gmra.mxu0 %v2540_v45 }
 0x6e2   :  { %v2578_v47 = vpop.f32.mrf.mxu0 }
 0x6e3   :  { %v2579_v48 = vadd.f32 %v3914_v46, %v2578_v47 }
 0x6e5   :  { %2581 = vst [vmem:[#allocation10] sm:$0xff] %v2579_v48 }
 0x6e6   :  { %2592 = dma.vmem_to_hbm [thread:$0]  %s2588_s16, 128, %s2590_s18, [#allocation6]  }
 0x6e7   :  { %4079 = dma.done.wait [#allocation6], 128  }
 0x6e8   :  { %4080 = vsyncadd [#allocation6], 4294967168 }
 0x6e9   :  { %2605 = vsyncpa [#allocation5], 1 }
 0x6ea   :  { %2606 = vsyncpa [#allocation8], 1 }
 0x6eb   :  { %2607 = vsyncpa [#allocation6], 1 }

</bundles_post_ra>
